<compile_context>
chip_gen: v6e
topology: v6e:2x2x1
jax: 0.10.0
libtpu: 0.0.40
codegen_flags: <defaults>
</compile_context>

<pallas_src>
import numpy as np
import jax
import jax.numpy as jnp
from jax.experimental import pallas as pl
from jax.experimental.pallas import tpu as pltpu

SELU_ALPHA = 1.6732632423543772848170429916717
SELU_SCALE = 1.0507009873554804934193349852946

_VMEM = pl.BlockSpec(memory_space=pltpu.MemorySpace.VMEM)


def _round_up(n, m):
    return ((n + m - 1) // m) * m


def _selu(z):
    return SELU_SCALE * jnp.where(z > 0, z, SELU_ALPHA * (jnp.exp(z) - 1.0))


def _layer_dims(H, W, channels):
    dims = []
    Hin, Win, Ci = H, W, 1
    for Co in channels:
        OH, OW = Hin - 2, Win - 2          # valid 3x3 conv
        PH, PW = OH // 2, OW // 2          # AvgPool2d(2, 2), ceil_mode=False
        assert OH >= 2 and OW >= 2 and PH >= 1 and PW >= 1
        dims.append(dict(Hin=Hin, Win=Win, Ci=Ci, Co=Co, OH=OH, OW=OW,
                         PH=PH, PW=PW, Kin=Ci * Hin, Kpad=_round_up(Ci * Hin, 8)))
        Hin, Win, Ci = PH, PW, Co
    return dims


# ----------------------------------------------------------------------------
# One-time, weight-only preprocessing (host-side numpy; cache & reuse result).
# ----------------------------------------------------------------------------
def _banded_concat_np(w, d):
    """w: (3, 3, Ci, Co) -> (Co*OH, 3*Kpad) K-concatenated banded conv matrix.

    Block kw occupies columns [kw*Kpad, kw*Kpad + Kin) with
      W[co*OH + oh, ci*Hin + h] = w[h - oh, kw, ci, co] for 0 <= h - oh < 3;
    the remaining (Kpad - Kin) columns per block are zero (they multiply the
    sublane zero-padding rows of the activation).
    """
    w = np.asarray(w, np.float32)
    OH, Hin, Ci, Co = d['OH'], d['Hin'], d['Ci'], d['Co']
    Kin, Kpad = d['Kin'], d['Kpad']
    band = np.stack([np.eye(OH, Hin, k=k, dtype=np.float32) for k in range(3)])
    t = np.einsum('koh,kwic->wcoih', band, w).reshape(3, Co * OH, Kin)
    out = np.zeros((Co * OH, 3 * Kpad), np.float32)
    for kw in range(3):
        out[:, kw * Kpad: kw * Kpad + Kin] = t[kw]
    return out


def _rowpool_np(d):
    """(Kpad_next, Co*OH): 0.5 at (co*PH+p, co*OH+2p) and (.., 2p+1).

    Per-channel row-pair averaging (exact for odd OH too: the trailing row is
    dropped, matching ceil_mode=False).  Rows >= Co*PH are zero so the pooled
    activation comes out already sublane-padded for the next layer's K-concat.
    """
    Co, OH, PH = d['Co'], d['OH'], d['PH']
    Rpad = _round_up(Co * PH, 8)
    m = np.zeros((Rpad, Co * OH), np.float32)
    for co in range(Co):
        for p in range(PH):
            m[co * PH + p, co * OH + 2 * p] = 0.5
            m[co * PH + p, co * OH + 2 * p + 1] = 0.5
    return m


def _colpoolsel_np(d, B):
    """(B*Win, B*PW): 0.5 at (b*Win+2q, b*PW+q) and (b*Win+2q+1, b*PW+q).

    Block-diagonal per lane-packed sample; averages valid column pairs and
    gives zero weight to the invalid / cross-sample (lane-shift wrap) columns.
    """
    Win, PW = d['Win'], d['PW']
    m = np.zeros((B * Win, B * PW), np.float32)
    for b in range(B):
        for q in range(PW):
            m[b * Win + 2 * q, b * PW + q] = 0.5
            m[b * Win + 2 * q + 1, b * PW + q] = 0.5
    return m


def _wout_map_np(w_out, d, B):
    """Linear weight laid out as the (row=(c,h), col=w) activation map, tiled
    once per lane-packed sample; sublane-padding rows are zero."""
    Co, PH, PW = d['Co'], d['PH'], d['PW']
    Rpad = _round_up(Co * PH, 8)
    w2d = np.asarray(w_out, np.float32).reshape(Co * PH, PW)
    m = np.zeros((Rpad, B * PW), np.float32)
    for b in range(B):
        m[:Co * PH, b * PW:(b + 1) * PW] = w2d
    return m


def _group_ones_np(d, B):
    """(B*PW, B) 0/1 matrix that sums each sample's PW lane-columns."""
    PW = d['PW']
    m = np.zeros((B * PW, B), np.float32)
    for b in range(B):
        m[b * PW:(b + 1) * PW, b] = 1.0
    return m


def prepare_params(params, *, H, W, B):
    """Weight-only / constant preprocessing.  Call ONCE per (params, B, H, W)
    and reuse the returned dict for every forward call -- nothing here depends
    on the activations, so it stays out of the per-step hot path."""
    C0 = int(params['w1'].shape[-1])
    C1 = int(params['w2'].shape[-1])
    C2 = int(params['w3'].shape[-1])
    dims = _layer_dims(H, W, (C0, C1, C2))
    d_last = dims[-1]
    flat_len = d_last['Co'] * d_last['PH'] * d_last['PW']
    assert flat_len == int(params['w_out'].shape[0]), (
        "input spatial size must make the final flatten equal nn.Linear's fan-in")

    p = {}
    for li, (d, wk, bk) in enumerate(
            zip(dims, ('w1', 'w2', 'w3'), ('b1', 'b2', 'b3')), start=1):
        p[f'wcat{li}'] = jnp.asarray(_banded_concat_np(params[wk], d))
        p[f'bias{li}'] = jnp.asarray(
            np.repeat(np.asarray(params[bk], np.float32), d['OH']).reshape(-1, 1))
        p[f'rowpool{li}'] = jnp.asarray(_rowpool_np(d))
        p[f'colpool{li}'] = jnp.asarray(_colpoolsel_np(d, B))
    p['wout_map'] = jnp.asarray(_wout_map_np(params['w_out'], d_last, B))
    p['group_ones'] = jnp.asarray(_group_ones_np(d_last, B))
    p['b_out'] = jnp.asarray(np.asarray(params['b_out'], np.float32).reshape(1, 1))
    return p


# ----------------------------------------------------------------------------
# Fused kernel: 3x {3x3 valid conv + SELU + 2x2 avg-pool} + Linear, grid=().
# ----------------------------------------------------------------------------
def _make_kernel(dims, B):
    d1 = dims[0]
    BW0 = B * d1['Win']

    def kernel(x_ref,
               wcat1_ref, b1_ref, rp1_ref, cp1_ref,
               wcat2_ref, b2_ref, rp2_ref, cp2_ref,
               wcat3_ref, b3_ref, rp3_ref, cp3_ref,
               wout_ref, gones_ref, bout_ref,
               y0_ref, y1_ref, y2_ref, out_ref):
        layer_refs = ((wcat1_ref, b1_ref, rp1_ref, cp1_ref),
                      (wcat2_ref, b2_ref, rp2_ref, cp2_ref),
                      (wcat3_ref, b3_ref, rp3_ref, cp3_ref))
        y_refs = (y0_ref, y1_ref, y2_ref)

        # Lane-pack the batch once: act[:, b*Win:(b+1)*Win] holds sample b.
        # Rows are (channel, image-row), zero-padded to a multiple of 8
        # sublanes so the K-concat below is vreg-tile aligned.
        act = jnp.concatenate([x_ref[b] for b in range(B)], axis=1)   # (H, B*W)
        if d1['Kpad'] > d1['Kin']:
            act = jnp.concatenate(
                [act, jnp.zeros((d1['Kpad'] - d1['Kin'], BW0), jnp.float32)],
                axis=0)                                               # (Kpad1, B*W)

        for li, d in enumerate(dims):                                 # static x3
            wcat_ref, b_ref, rp_ref, cp_ref = layer_refs[li]
            # One MXU matmul per conv: K-concatenated banded weights against a
            # sublane-stacked RHS of the three lane-shifted activation views.
            # Columns whose shift wraps across a sample boundary are garbage
            # (finite) and get zero weight in the column-pool matrix.
            sh1 = jnp.concatenate([act[:, 1:], act[:, :1]], axis=1)
            sh2 = jnp.concatenate([act[:, 2:], act[:, :2]], axis=1)
            rhs = jnp.concatenate([act, sh1, sh2], axis=0)            # (3*Kpad, B*Win)
            z = jnp.dot(wcat_ref[...], rhs, preferred_element_type=jnp.float32)
            s = _selu(z + b_ref[...])                                 # (Co*OH, B*Win)
            # 2x2 average pool (+ valid-column selection) as two matmuls; the
            # row-pool also zero-pads rows to the next layer's Kpad.
            pooled = jnp.dot(
                jnp.dot(rp_ref[...], s, preferred_element_type=jnp.float32),
                cp_ref[...], preferred_element_type=jnp.float32)      # (Kpad_next, B*PW)
            CoPH, PW = d['Co'] * d['PH'], d['PW']
            for b in range(B):
                # Rows are (c, h), columns are w -> this slab IS the NCHW
                # x.view(B, -1) flatten once reshaped in the wrapper.
                y_refs[li][b] = pooled[0:CoPH, b * PW:(b + 1) * PW]
            act = pooled

        # Final nn.Linear(dout*3, 1), folded into the same kernel.
        t = act * wout_ref[...]                                       # (Kpad3, B*PW3)
        colsum = jnp.sum(t, axis=0, keepdims=True)                    # (1, B*PW3)
        out_ref[...] = (jnp.dot(colsum, gones_ref[...],
                                preferred_element_type=jnp.float32)
                        + bout_ref[...])                              # (1, B)

    return kernel


def dml_convnet_forward(x, prepped):
    """x: (B, H, W) float32; prepped: dict from prepare_params (same B, H, W).

    Returns (out, [y0, y1, y2, y3]) exactly like DMLConvNet.forward.
    """
    x = x.astype(jnp.float32)
    B, H, W = x.shape
    # Channel counts are recovered statically from the prepared weight shapes.
    channels = []
    Hin = H
    for li in (1, 2, 3):
        OH = Hin - 2
        channels.append(prepped[f'wcat{li}'].shape[0] // OH)
        Hin = OH // 2
    dims = _layer_dims(H, W, tuple(channels))
    d1, d2, d3 = dims
    assert prepped['colpool1'].shape[0] == B * d1['Win'], (
        "prepare_params was built for a different batch size / width")

    out_shape = (
        jax.ShapeDtypeStruct((B, d1['Co'] * d1['PH'], d1['PW']), jnp.float32),
        jax.ShapeDtypeStruct((B, d2['Co'] * d2['PH'], d2['PW']), jnp.float32),
        jax.ShapeDtypeStruct((B, d3['Co'] * d3['PH'], d3['PW']), jnp.float32),
        jax.ShapeDtypeStruct((1, B), jnp.float32),
    )
    y0r, y1r, y2r, out_r = pl.pallas_call(
        _make_kernel(dims, B),
        out_shape=out_shape,
        in_specs=[_VMEM] * 16,
        out_specs=(_VMEM, _VMEM, _VMEM, _VMEM),
    )(x,
      prepped['wcat1'], prepped['bias1'], prepped['rowpool1'], prepped['colpool1'],
      prepped['wcat2'], prepped['bias2'], prepped['rowpool2'], prepped['colpool2'],
      prepped['wcat3'], prepped['bias3'], prepped['rowpool3'], prepped['colpool3'],
      prepped['wout_map'], prepped['group_ones'], prepped['b_out'])

    out = out_r.reshape(B, 1)                      # contiguous, free
    # y_i leave the kernel already in NCHW (c, h, w) order -> free flatten,
    # identical to PyTorch's x.view(B, -1).
    y = [y0r.reshape(B, -1), y1r.reshape(B, -1), y2r.reshape(B, -1), out]
    return out, y


def init_params(key, dout=8, C=(6, 6)):
    ks = jax.random.split(key, 8)

    def conv_w(k, cin, cout):
        # layout (kh, kw, cin, cout); torch_weight[co, ci, kh, kw] == w[kh, kw, ci, co]
        return jax.random.normal(k, (3, 3, cin, cout), jnp.float32) / jnp.sqrt(9.0 * cin)

    return {
        "w1": conv_w(ks[0], 1, C[0]),
        "b1": 0.01 * jax.random.normal(ks[1], (C[0],), jnp.float32),
        "w2": conv_w(ks[2], C[0], C[1]),
        "b2": 0.01 * jax.random.normal(ks[3], (C[1],), jnp.float32),
        "w3": conv_w(ks[4], C[1], dout),
        "b3": 0.01 * jax.random.normal(ks[5], (dout,), jnp.float32),
        "w_out": jax.random.normal(ks[6], (dout * 3, 1), jnp.float32) / jnp.sqrt(dout * 3.0),
        "b_out": 0.01 * jax.random.normal(ks[7], (1,), jnp.float32),
    }


if __name__ == "__main__":
    key = jax.random.PRNGKey(0)
    kx, kp = jax.random.split(key)

    dout, C = 8, (6, 6)
    B, H, W = 2, 38, 25
    # W=25 matches the module's default din=25; H=38 makes the final pooled
    # map 3x1 so the flatten size is dout*3, exactly what nn.Linear(dout*3, 1)
    # requires.  Chain: 38x25 -> 36x23 -> 18x11 -> 16x9 -> 8x4 -> 6x2 -> 3x1.
    x = jax.random.normal(kx, (B, H, W), jnp.float32)
    params = init_params(kp, dout=dout, C=C)

    # Weight-only prep: done ONCE here, cached, reused by every forward call.
    prepped = prepare_params(params, H=H, W=W, B=B)

    fwd = jax.jit(dml_convnet_forward)
    out, y = fwd(x, prepped)
    jax.block_until_ready(out)
    for yi in y:
        jax.block_until_ready(yi)

    assert out.shape == (B, 1)
    assert y[0].shape == (B, C[0] * 18 * 11)
    assert y[1].shape == (B, C[1] * 8 * 4)
    assert y[2].shape == (B, dout * 3)
    assert y[3].shape == (B, 1)
    assert bool(jnp.all(jnp.isfinite(out)))

    print("KERNEL_OK")
</pallas_src>

<mosaic_0001>
module attributes {stable_mosaic.version = 11 : i64} {
  func.func @kernel(%arg0: memref<2x38x25xf32, #tpu.memory_space<vmem>>, %arg1: memref<216x120xf32, #tpu.memory_space<vmem>>, %arg2: memref<216x1xf32, #tpu.memory_space<vmem>>, %arg3: memref<112x216xf32, #tpu.memory_space<vmem>>, %arg4: memref<50x22xf32, #tpu.memory_space<vmem>>, %arg5: memref<96x336xf32, #tpu.memory_space<vmem>>, %arg6: memref<96x1xf32, #tpu.memory_space<vmem>>, %arg7: memref<48x96xf32, #tpu.memory_space<vmem>>, %arg8: memref<22x8xf32, #tpu.memory_space<vmem>>, %arg9: memref<48x144xf32, #tpu.memory_space<vmem>>, %arg10: memref<48x1xf32, #tpu.memory_space<vmem>>, %arg11: memref<24x48xf32, #tpu.memory_space<vmem>>, %arg12: memref<8x2xf32, #tpu.memory_space<vmem>>, %arg13: memref<24x2xf32, #tpu.memory_space<vmem>>, %arg14: memref<2x2xf32, #tpu.memory_space<vmem>>, %arg15: memref<1x1xf32, #tpu.memory_space<vmem>>, %arg16: memref<2x108x11xf32, #tpu.memory_space<vmem>>, %arg17: memref<2x48x4xf32, #tpu.memory_space<vmem>>, %arg18: memref<2x24x1xf32, #tpu.memory_space<vmem>>, %arg19: memref<1x2xf32, #tpu.memory_space<vmem>>) attributes {dimension_semantics = [], scalar_prefetch = 0 : i64, scratch_operands = 0 : i64, tpu.core_type = #tpu.core_type<tc>} {
    %c0 = arith.constant 0 : index
    %c0_0 = arith.constant 0 : index
    %c0_1 = arith.constant 0 : index
    %0 = vector.load %arg0[%c0, %c0_0, %c0_1] : memref<2x38x25xf32, #tpu.memory_space<vmem>>, vector<1x38x25xf32>
    %1 = vector.shape_cast %0 : vector<1x38x25xf32> to vector<38x25xf32>
    %c1 = arith.constant 1 : index
    %c0_2 = arith.constant 0 : index
    %c0_3 = arith.constant 0 : index
    %2 = vector.load %arg0[%c1, %c0_2, %c0_3] : memref<2x38x25xf32, #tpu.memory_space<vmem>>, vector<1x38x25xf32>
    %3 = vector.shape_cast %2 : vector<1x38x25xf32> to vector<38x25xf32>
    %4 = tpu.concatenate %1, %3 in 1 : vector<38x25xf32>, vector<38x25xf32> -> vector<38x50xf32>
    %cst = arith.constant 0.000000e+00 : f32
    %5 = vector.broadcast %cst : f32 to vector<2x50xf32>
    %6 = tpu.concatenate %4, %5 in 0 : vector<38x50xf32>, vector<2x50xf32> -> vector<40x50xf32>
    %7 = vector.extract_strided_slice %6 {offsets = [0, 1], sizes = [40, 49], strides = [1, 1]} : vector<40x50xf32> to vector<40x49xf32>
    %8 = vector.extract_strided_slice %6 {offsets = [0, 0], sizes = [40, 1], strides = [1, 1]} : vector<40x50xf32> to vector<40x1xf32>
    %9 = tpu.concatenate %7, %8 in 1 : vector<40x49xf32>, vector<40x1xf32> -> vector<40x50xf32>
    %10 = vector.extract_strided_slice %6 {offsets = [0, 2], sizes = [40, 48], strides = [1, 1]} : vector<40x50xf32> to vector<40x48xf32>
    %11 = vector.extract_strided_slice %6 {offsets = [0, 0], sizes = [40, 2], strides = [1, 1]} : vector<40x50xf32> to vector<40x2xf32>
    %12 = tpu.concatenate %10, %11 in 1 : vector<40x48xf32>, vector<40x2xf32> -> vector<40x50xf32>
    %13 = tpu.concatenate %6, %9, %12 in 0 : vector<40x50xf32>, vector<40x50xf32>, vector<40x50xf32> -> vector<120x50xf32>
    %c0_4 = arith.constant 0 : index
    %c0_5 = arith.constant 0 : index
    %14 = vector.load %arg1[%c0_4, %c0_5] : memref<216x120xf32, #tpu.memory_space<vmem>>, vector<216x120xf32>
    %cst_6 = arith.constant dense<0.000000e+00> : vector<216x50xf32>
    %15 = tpu.matmul %14, %13, %cst_6 {dimension_numbers = #tpu.dot_dimension_numbers<[1], [0], [0], [1], [0, 0, 1, 1], [], []>} : vector<216x120xf32>, vector<120x50xf32>, vector<216x50xf32> -> vector<216x50xf32>
    %c0_7 = arith.constant 0 : index
    %c0_8 = arith.constant 0 : index
    %16 = vector.load %arg2[%c0_7, %c0_8] : memref<216x1xf32, #tpu.memory_space<vmem>>, vector<216x1xf32>
    %17 = vector.broadcast %16 : vector<216x1xf32> to vector<216x50xf32>
    %18 = arith.addf %15, %17 : vector<216x50xf32>
    %cst_9 = arith.constant 0.000000e+00 : f32
    %19 = vector.broadcast %cst_9 : f32 to vector<216x50xf32>
    %20 = arith.cmpf ogt, %18, %19 : vector<216x50xf32>
    %21 = math.exp %18 : vector<216x50xf32>
    %cst_10 = arith.constant 1.000000e+00 : f32
    %22 = vector.broadcast %cst_10 : f32 to vector<216x50xf32>
    %23 = arith.subf %21, %22 : vector<216x50xf32>
    %cst_11 = arith.constant 1.67326319 : f32
    %24 = vector.broadcast %cst_11 : f32 to vector<216x50xf32>
    %25 = arith.mulf %24, %23 : vector<216x50xf32>
    %26 = arith.select %20, %18, %25 : vector<216x50xi1>, vector<216x50xf32>
    %cst_12 = arith.constant 1.05070102 : f32
    %27 = vector.broadcast %cst_12 : f32 to vector<216x50xf32>
    %28 = arith.mulf %27, %26 : vector<216x50xf32>
    %c0_13 = arith.constant 0 : index
    %c0_14 = arith.constant 0 : index
    %29 = vector.load %arg3[%c0_13, %c0_14] : memref<112x216xf32, #tpu.memory_space<vmem>>, vector<112x216xf32>
    %cst_15 = arith.constant dense<0.000000e+00> : vector<112x50xf32>
    %30 = tpu.matmul %29, %28, %cst_15 {dimension_numbers = #tpu.dot_dimension_numbers<[1], [0], [0], [1], [0, 0, 1, 1], [], []>} : vector<112x216xf32>, vector<216x50xf32>, vector<112x50xf32> -> vector<112x50xf32>
    %c0_16 = arith.constant 0 : index
    %c0_17 = arith.constant 0 : index
    %31 = vector.load %arg4[%c0_16, %c0_17] : memref<50x22xf32, #tpu.memory_space<vmem>>, vector<50x22xf32>
    %cst_18 = arith.constant dense<0.000000e+00> : vector<112x22xf32>
    %32 = tpu.matmul %30, %31, %cst_18 {dimension_numbers = #tpu.dot_dimension_numbers<[1], [0], [0], [1], [0, 0, 1, 1], [], []>} : vector<112x50xf32>, vector<50x22xf32>, vector<112x22xf32> -> vector<112x22xf32>
    %33 = vector.extract_strided_slice %32 {offsets = [0, 0], sizes = [108, 11], strides = [1, 1]} : vector<112x22xf32> to vector<108x11xf32>
    %c0_19 = arith.constant 0 : index
    %c0_20 = arith.constant 0 : index
    %c0_21 = arith.constant 0 : index
    %34 = vector.load %arg16[%c0_19, %c0_20, %c0_21] : memref<2x108x11xf32, #tpu.memory_space<vmem>>, vector<1x108x11xf32>
    %35 = vector.shape_cast %34 : vector<1x108x11xf32> to vector<108x11xf32>
    %36 = vector.shape_cast %33 : vector<108x11xf32> to vector<1x108x11xf32>
    tpu.vector_store %arg16[%c0_19, %c0_20, %c0_21], %36 {strides = array<i32>} : memref<2x108x11xf32, #tpu.memory_space<vmem>>, vector<1x108x11xf32>,
    %37 = vector.extract_strided_slice %32 {offsets = [0, 11], sizes = [108, 11], strides = [1, 1]} : vector<112x22xf32> to vector<108x11xf32>
    %c1_22 = arith.constant 1 : index
    %c0_23 = arith.constant 0 : index
    %c0_24 = arith.constant 0 : index
    %38 = vector.load %arg16[%c1_22, %c0_23, %c0_24] : memref<2x108x11xf32, #tpu.memory_space<vmem>>, vector<1x108x11xf32>
    %39 = vector.shape_cast %38 : vector<1x108x11xf32> to vector<108x11xf32>
    %40 = vector.shape_cast %37 : vector<108x11xf32> to vector<1x108x11xf32>
    tpu.vector_store %arg16[%c1_22, %c0_23, %c0_24], %40 {strides = array<i32>} : memref<2x108x11xf32, #tpu.memory_space<vmem>>, vector<1x108x11xf32>,
    %41 = vector.extract_strided_slice %32 {offsets = [0, 1], sizes = [112, 21], strides = [1, 1]} : vector<112x22xf32> to vector<112x21xf32>
    %42 = vector.extract_strided_slice %32 {offsets = [0, 0], sizes = [112, 1], strides = [1, 1]} : vector<112x22xf32> to vector<112x1xf32>
    %43 = tpu.concatenate %41, %42 in 1 : vector<112x21xf32>, vector<112x1xf32> -> vector<112x22xf32>
    %44 = vector.extract_strided_slice %32 {offsets = [0, 2], sizes = [112, 20], strides = [1, 1]} : vector<112x22xf32> to vector<112x20xf32>
    %45 = vector.extract_strided_slice %32 {offsets = [0, 0], sizes = [112, 2], strides = [1, 1]} : vector<112x22xf32> to vector<112x2xf32>
    %46 = tpu.concatenate %44, %45 in 1 : vector<112x20xf32>, vector<112x2xf32> -> vector<112x22xf32>
    %47 = tpu.concatenate %32, %43, %46 in 0 : vector<112x22xf32>, vector<112x22xf32>, vector<112x22xf32> -> vector<336x22xf32>
    %c0_25 = arith.constant 0 : index
    %c0_26 = arith.constant 0 : index
    %48 = vector.load %arg5[%c0_25, %c0_26] : memref<96x336xf32, #tpu.memory_space<vmem>>, vector<96x336xf32>
    %cst_27 = arith.constant dense<0.000000e+00> : vector<96x22xf32>
    %49 = tpu.matmul %48, %47, %cst_27 {dimension_numbers = #tpu.dot_dimension_numbers<[1], [0], [0], [1], [0, 0, 1, 1], [], []>} : vector<96x336xf32>, vector<336x22xf32>, vector<96x22xf32> -> vector<96x22xf32>
    %c0_28 = arith.constant 0 : index
    %c0_29 = arith.constant 0 : index
    %50 = vector.load %arg6[%c0_28, %c0_29] : memref<96x1xf32, #tpu.memory_space<vmem>>, vector<96x1xf32>
    %51 = vector.broadcast %50 : vector<96x1xf32> to vector<96x22xf32>
    %52 = arith.addf %49, %51 : vector<96x22xf32>
    %cst_30 = arith.constant 0.000000e+00 : f32
    %53 = vector.broadcast %cst_30 : f32 to vector<96x22xf32>
    %54 = arith.cmpf ogt, %52, %53 : vector<96x22xf32>
    %55 = math.exp %52 : vector<96x22xf32>
    %cst_31 = arith.constant 1.000000e+00 : f32
    %56 = vector.broadcast %cst_31 : f32 to vector<96x22xf32>
    %57 = arith.subf %55, %56 : vector<96x22xf32>
    %cst_32 = arith.constant 1.67326319 : f32
    %58 = vector.broadcast %cst_32 : f32 to vector<96x22xf32>
    %59 = arith.mulf %58, %57 : vector<96x22xf32>
    %60 = arith.select %54, %52, %59 : vector<96x22xi1>, vector<96x22xf32>
    %cst_33 = arith.constant 1.05070102 : f32
    %61 = vector.broadcast %cst_33 : f32 to vector<96x22xf32>
    %62 = arith.mulf %61, %60 : vector<96x22xf32>
    %c0_34 = arith.constant 0 : index
    %c0_35 = arith.constant 0 : index
    %63 = vector.load %arg7[%c0_34, %c0_35] : memref<48x96xf32, #tpu.memory_space<vmem>>, vector<48x96xf32>
    %cst_36 = arith.constant dense<0.000000e+00> : vector<48x22xf32>
    %64 = tpu.matmul %63, %62, %cst_36 {dimension_numbers = #tpu.dot_dimension_numbers<[1], [0], [0], [1], [0, 0, 1, 1], [], []>} : vector<48x96xf32>, vector<96x22xf32>, vector<48x22xf32> -> vector<48x22xf32>
    %c0_37 = arith.constant 0 : index
    %c0_38 = arith.constant 0 : index
    %65 = vector.load %arg8[%c0_37, %c0_38] : memref<22x8xf32, #tpu.memory_space<vmem>>, vector<22x8xf32>
    %cst_39 = arith.constant dense<0.000000e+00> : vector<48x8xf32>
    %66 = tpu.matmul %64, %65, %cst_39 {dimension_numbers = #tpu.dot_dimension_numbers<[1], [0], [0], [1], [0, 0, 1, 1], [], []>} : vector<48x22xf32>, vector<22x8xf32>, vector<48x8xf32> -> vector<48x8xf32>
    %67 = vector.extract_strided_slice %66 {offsets = [0, 0], sizes = [48, 4], strides = [1, 1]} : vector<48x8xf32> to vector<48x4xf32>
    %c0_40 = arith.constant 0 : index
    %c0_41 = arith.constant 0 : index
    %c0_42 = arith.constant 0 : index
    %68 = vector.load %arg17[%c0_40, %c0_41, %c0_42] : memref<2x48x4xf32, #tpu.memory_space<vmem>>, vector<1x48x4xf32>
    %69 = vector.shape_cast %68 : vector<1x48x4xf32> to vector<48x4xf32>
    %70 = vector.shape_cast %67 : vector<48x4xf32> to vector<1x48x4xf32>
    tpu.vector_store %arg17[%c0_40, %c0_41, %c0_42], %70 {strides = array<i32>} : memref<2x48x4xf32, #tpu.memory_space<vmem>>, vector<1x48x4xf32>,
    %71 = vector.extract_strided_slice %66 {offsets = [0, 4], sizes = [48, 4], strides = [1, 1]} : vector<48x8xf32> to vector<48x4xf32>
    %c1_43 = arith.constant 1 : index
    %c0_44 = arith.constant 0 : index
    %c0_45 = arith.constant 0 : index
    %72 = vector.load %arg17[%c1_43, %c0_44, %c0_45] : memref<2x48x4xf32, #tpu.memory_space<vmem>>, vector<1x48x4xf32>
    %73 = vector.shape_cast %72 : vector<1x48x4xf32> to vector<48x4xf32>
    %74 = vector.shape_cast %71 : vector<48x4xf32> to vector<1x48x4xf32>
    tpu.vector_store %arg17[%c1_43, %c0_44, %c0_45], %74 {strides = array<i32>} : memref<2x48x4xf32, #tpu.memory_space<vmem>>, vector<1x48x4xf32>,
    %75 = vector.extract_strided_slice %66 {offsets = [0, 1], sizes = [48, 7], strides = [1, 1]} : vector<48x8xf32> to vector<48x7xf32>
    %76 = vector.extract_strided_slice %66 {offsets = [0, 0], sizes = [48, 1], strides = [1, 1]} : vector<48x8xf32> to vector<48x1xf32>
    %77 = tpu.concatenate %75, %76 in 1 : vector<48x7xf32>, vector<48x1xf32> -> vector<48x8xf32>
    %78 = vector.extract_strided_slice %66 {offsets = [0, 2], sizes = [48, 6], strides = [1, 1]} : vector<48x8xf32> to vector<48x6xf32>
    %79 = vector.extract_strided_slice %66 {offsets = [0, 0], sizes = [48, 2], strides = [1, 1]} : vector<48x8xf32> to vector<48x2xf32>
    %80 = tpu.concatenate %78, %79 in 1 : vector<48x6xf32>, vector<48x2xf32> -> vector<48x8xf32>
    %81 = tpu.concatenate %66, %77, %80 in 0 : vector<48x8xf32>, vector<48x8xf32>, vector<48x8xf32> -> vector<144x8xf32>
    %c0_46 = arith.constant 0 : index
    %c0_47 = arith.constant 0 : index
    %82 = vector.load %arg9[%c0_46, %c0_47] : memref<48x144xf32, #tpu.memory_space<vmem>>, vector<48x144xf32>
    %cst_48 = arith.constant dense<0.000000e+00> : vector<48x8xf32>
    %83 = tpu.matmul %82, %81, %cst_48 {dimension_numbers = #tpu.dot_dimension_numbers<[1], [0], [0], [1], [0, 0, 1, 1], [], []>} : vector<48x144xf32>, vector<144x8xf32>, vector<48x8xf32> -> vector<48x8xf32>
    %c0_49 = arith.constant 0 : index
    %c0_50 = arith.constant 0 : index
    %84 = vector.load %arg10[%c0_49, %c0_50] : memref<48x1xf32, #tpu.memory_space<vmem>>, vector<48x1xf32>
    %85 = vector.broadcast %84 : vector<48x1xf32> to vector<48x8xf32>
    %86 = arith.addf %83, %85 : vector<48x8xf32>
    %cst_51 = arith.constant 0.000000e+00 : f32
    %87 = vector.broadcast %cst_51 : f32 to vector<48x8xf32>
    %88 = arith.cmpf ogt, %86, %87 : vector<48x8xf32>
    %89 = math.exp %86 : vector<48x8xf32>
    %cst_52 = arith.constant 1.000000e+00 : f32
    %90 = vector.broadcast %cst_52 : f32 to vector<48x8xf32>
    %91 = arith.subf %89, %90 : vector<48x8xf32>
    %cst_53 = arith.constant 1.67326319 : f32
    %92 = vector.broadcast %cst_53 : f32 to vector<48x8xf32>
    %93 = arith.mulf %92, %91 : vector<48x8xf32>
    %94 = arith.select %88, %86, %93 : vector<48x8xi1>, vector<48x8xf32>
    %cst_54 = arith.constant 1.05070102 : f32
    %95 = vector.broadcast %cst_54 : f32 to vector<48x8xf32>
    %96 = arith.mulf %95, %94 : vector<48x8xf32>
    %c0_55 = arith.constant 0 : index
    %c0_56 = arith.constant 0 : index
    %97 = vector.load %arg11[%c0_55, %c0_56] : memref<24x48xf32, #tpu.memory_space<vmem>>, vector<24x48xf32>
    %cst_57 = arith.constant dense<0.000000e+00> : vector<24x8xf32>
    %98 = tpu.matmul %97, %96, %cst_57 {dimension_numbers = #tpu.dot_dimension_numbers<[1], [0], [0], [1], [0, 0, 1, 1], [], []>} : vector<24x48xf32>, vector<48x8xf32>, vector<24x8xf32> -> vector<24x8xf32>
    %c0_58 = arith.constant 0 : index
    %c0_59 = arith.constant 0 : index
    %99 = vector.load %arg12[%c0_58, %c0_59] : memref<8x2xf32, #tpu.memory_space<vmem>>, vector<8x2xf32>
    %cst_60 = arith.constant dense<0.000000e+00> : vector<24x2xf32>
    %100 = tpu.matmul %98, %99, %cst_60 {dimension_numbers = #tpu.dot_dimension_numbers<[1], [0], [0], [1], [0, 0, 1, 1], [], []>} : vector<24x8xf32>, vector<8x2xf32>, vector<24x2xf32> -> vector<24x2xf32>
    %101 = vector.extract_strided_slice %100 {offsets = [0, 0], sizes = [24, 1], strides = [1, 1]} : vector<24x2xf32> to vector<24x1xf32>
    %c0_61 = arith.constant 0 : index
    %c0_62 = arith.constant 0 : index
    %c0_63 = arith.constant 0 : index
    %102 = vector.load %arg18[%c0_61, %c0_62, %c0_63] : memref<2x24x1xf32, #tpu.memory_space<vmem>>, vector<1x24x1xf32>
    %103 = vector.shape_cast %102 : vector<1x24x1xf32> to vector<24x1xf32>
    %104 = vector.shape_cast %101 : vector<24x1xf32> to vector<1x24x1xf32>
    tpu.vector_store %arg18[%c0_61, %c0_62, %c0_63], %104 {strides = array<i32>} : memref<2x24x1xf32, #tpu.memory_space<vmem>>, vector<1x24x1xf32>,
    %105 = vector.extract_strided_slice %100 {offsets = [0, 1], sizes = [24, 1], strides = [1, 1]} : vector<24x2xf32> to vector<24x1xf32>
    %c1_64 = arith.constant 1 : index
    %c0_65 = arith.constant 0 : index
    %c0_66 = arith.constant 0 : index
    %106 = vector.load %arg18[%c1_64, %c0_65, %c0_66] : memref<2x24x1xf32, #tpu.memory_space<vmem>>, vector<1x24x1xf32>
    %107 = vector.shape_cast %106 : vector<1x24x1xf32> to vector<24x1xf32>
    %108 = vector.shape_cast %105 : vector<24x1xf32> to vector<1x24x1xf32>
    tpu.vector_store %arg18[%c1_64, %c0_65, %c0_66], %108 {strides = array<i32>} : memref<2x24x1xf32, #tpu.memory_space<vmem>>, vector<1x24x1xf32>,
    %c0_67 = arith.constant 0 : index
    %c0_68 = arith.constant 0 : index
    %109 = vector.load %arg13[%c0_67, %c0_68] : memref<24x2xf32, #tpu.memory_space<vmem>>, vector<24x2xf32>
    %110 = arith.mulf %100, %109 : vector<24x2xf32>
    %cst_69 = arith.constant dense<0.000000e+00> : vector<2xf32>
    %111 = vector.multi_reduction <add>, %110, %cst_69 [0] : vector<24x2xf32> to vector<2xf32>
    %112 = vector.shape_cast %111 : vector<2xf32> to vector<1x2xf32>
    %c0_70 = arith.constant 0 : index
    %c0_71 = arith.constant 0 : index
    %113 = vector.load %arg14[%c0_70, %c0_71] : memref<2x2xf32, #tpu.memory_space<vmem>>, vector<2x2xf32>
    %cst_72 = arith.constant dense<0.000000e+00> : vector<1x2xf32>
    %114 = tpu.matmul %112, %113, %cst_72 {dimension_numbers = #tpu.dot_dimension_numbers<[1], [0], [0], [1], [0, 0, 1, 1], [], []>} : vector<1x2xf32>, vector<2x2xf32>, vector<1x2xf32> -> vector<1x2xf32>
    %c0_73 = arith.constant 0 : index
    %c0_74 = arith.constant 0 : index
    %115 = vector.load %arg15[%c0_73, %c0_74] : memref<1x1xf32, #tpu.memory_space<vmem>>, vector<1x1xf32>
    %116 = vector.broadcast %115 : vector<1x1xf32> to vector<1x2xf32>
    %117 = arith.addf %114, %116 : vector<1x2xf32>
    %c0_75 = arith.constant 0 : index
    %c0_76 = arith.constant 0 : index
    %118 = vector.load %arg19[%c0_75, %c0_76] : memref<1x2xf32, #tpu.memory_space<vmem>>, vector<1x2xf32>
    tpu.vector_store %arg19[%c0_75, %c0_76], %117 {strides = array<i32>} : memref<1x2xf32, #tpu.memory_space<vmem>>, vector<1x2xf32>,
    return
  }
}

</mosaic_0001>

<bundles_post_ra>
// kernel: dml_convnet_forward.1
= control target key start
LH: loop header
LB: loop body
LE: loop exit
PB: predicated region body
PF: predicated region fallthrough
CT: control target
= control target key end

     0   :  { %s3627_s22 = smov 25   ;;  %vm90_vm0 = vcmask 203776   ;;  %s3628_s30 = smov 48   ;;  %v5351_v14 = vmov 0.0   ;;  %vm96_vm1 = vcmask 1045504   ;;  %vm3633_vm2 = vmmov 0   ;;  %s5327_s0 = inlined_call_operand.vmem [shape: f32[2,38,25], index: 0, kind: input, shape index: {}]   ;;  %s5328_s2 = inlined_call_operand.vmem [shape: f32[216,1], index: 2, kind: input, shape index: {}]   ;;  %s5329_s1 = inlined_call_operand.vmem [shape: f32[216,120], index: 1, kind: input, shape index: {}]   ;;  %s5330_s3 = inlined_call_operand.vmem [shape: f32[112,216], index: 3, kind: input, shape index: {}]   ;;  %s5331_s4 = inlined_call_operand.vmem [shape: f32[50,22], index: 4, kind: input, shape index: {}]   ;;  %s5332_s16 = inlined_call_operand.vmem [shape: f32[2,108,11], index: 16, kind: output, shape index: {0}]   ;;  %s5333_s5 = inlined_call_operand.vmem [shape: f32[96,336], index: 5, kind: input, shape index: {}]   ;;  %s5334_s6 = inlined_call_operand.vmem [shape: f32[96,1], index: 6, kind: input, shape index: {}]   ;;  %s5335_s7 = inlined_call_operand.vmem [shape: f32[48,96], index: 7, kind: input, shape index: {}]   ;;  %s5336_s8 = inlined_call_operand.vmem [shape: f32[22,8], index: 8, kind: input, shape index: {}]   ;;  %s5337_s15 = inlined_call_operand.<no memory space> [shape: f32[1,1], index: 15, kind: input, shape index: {}]   ;;  %s5338_s17 = inlined_call_operand.vmem [shape: f32[2,48,4], index: 17, kind: output, shape index: {1}]   ;;  %s5339_s9 = inlined_call_operand.vmem [shape: f32[48,144], index: 9, kind: input, shape index: {}]   ;;  %s5340_s10 = inlined_call_operand.vmem [shape: f32[48,1], index: 10, kind: input, shape index: {}]   ;;  %s5341_s11 = inlined_call_operand.vmem [shape: f32[24,48], index: 11, kind: input, shape index: {}]   ;;  %s5342_s12 = inlined_call_operand.vmem [shape: f32[8,2], index: 12, kind: input, shape index: {}]   ;;  %s5343_s14 = inlined_call_operand.vmem [shape: f32[2,2], index: 14, kind: input, shape index: {}]   ;;  %s5344_s18 = inlined_call_operand.vmem [shape: f32[2,24,1], index: 18, kind: output, shape index: {2}]   ;;  %s5345_s13 = inlined_call_operand.vmem [shape: f32[24,2], index: 13, kind: input, shape index: {}]   ;;  %s5346_s19 = inlined_call_operand.vmem [shape: f32[1,2], index: 19, kind: output, shape index: {3}]  }
   0x1   :  { %5354 = sst [smem:[#allocation4_spill]] %s5327_s0  ;;  %s3629_s21 = smov 126   ;;  %3252 = vmatprep.subr.mxu0 %v5351_v14  ;;  %906 = vmatprep.subr.mxu1 %v5351_v14  ;;  %v3634_v22 = vmov 0   ;;  %vm169_vm3 = vcmask 392192   ;;  %vm133_vm4 = vcmask 400384   ;;  %vm364_vm5 = vcmask 982016  }
   0x2   :  { %5355 = sst [smem:[#allocation5_spill]] %s5328_s2  ;;  %3282 = vmatprep.mubr.msk.f32.mxu0 %vm3633_vm2, %v5351_v14  ;;  %3535 = vset.pattern.permute.xlu1 %v3634_v22  ;;  %vm863_vm6 = vcmask 719872   ;;  %s3635_s25 = smov 21  }
   0x3   :  { %5356 = sst [smem:[#allocation6_spill]] %s5329_s1  ;;  %3536 = vset.pattern.permute.xlu0 %v3634_v22  ;;  %s3636_s26 = smov 20  }
   0x4   :  { %5357 = sst [smem:[#allocation7_spill]] %s5330_s3  ;;  %s3631_s3 = smov 49  }
   0x5   :  { %s5358_s20 = sld [smem:[#allocation4_spill]]  ;;  %s3639_s29 = smov 117  }
   0x6   :  { %s5359_s28 = sld [smem:[#allocation5_spill]] }
   0x7   :  { %s5360_s23 = sld [smem:[#allocation6_spill]] }
   0x8   :  { %s5361_s27 = sld [smem:[#allocation7_spill]] }
   0xb   :  { %v2892_v0 = vld [vmem:[%s5358_s20 + $0x48] sm:$0x3f]  ;;  %v2890_v1 = vld [vmem:[%s5358_s20 + $0x38] sm:$0xff]  ;;  %v2891_v2 = vld [vmem:[%s5358_s20 + $0x40] sm:$0xff] }
   0xc   :  { %83 = vrot.lane.b32.xlu0 %v2892_v0, %s3627_s22  ;;  %79 = vrot.lane.b32.xlu1 %v2890_v1, %s3627_s22  ;;  %v2889_v3 = vld [vmem:[%s5358_s20 + $0x30] sm:$0xff]  ;;  %v2888_v4 = vld [vmem:[%s5358_s20 + $0x28] sm:$0xff] }
   0xd   :  { %v62_v6 = vld [vmem:[%s5358_s20 + $0x18] sm:$0xff]  ;;  %v61_v9 = vld [vmem:[%s5358_s20 + $0x10] sm:$0xff]  ;;  %v60_v13 = vld [vmem:[%s5358_s20 + $0x8] sm:$0xff] }
   0xe   :  { %v59_v17 = vld [vmem:[%s5358_s20] sm:$0xff]  ;;  %v217_v23 = vld [vmem:[%s5359_s28 + $0x78] sm:$0xff]  ;;  %v215_v24 = vld [vmem:[%s5359_s28 + $0x68] sm:$0xff] }
   0xf   :  { %v63_v18 = vld [vmem:[%s5358_s20 + $0x20] sm:$0x3f]  ;;  %s3632_s20 = smov 127   ;;  %v216_v26 = vld [vmem:[%s5359_s28 + $0x70] sm:$0xff]  ;;  %v213_v28 = vld [vmem:[%s5359_s28 + $0x58] sm:$0xff] }
  0x10   :  { %81 = vrot.lane.b32.xlu0 %v2891_v2, %s3627_s22  ;;  %77 = vrot.lane.b32.xlu1 %v2889_v3, %s3627_s22  ;;  %v214_v25 = vld [vmem:[%s5359_s28 + $0x60] sm:$0xff]  ;;  %v212_v27 = vld [vmem:[%s5359_s28 + $0x50] sm:$0xff] }
  0x11   :  { %v210_v29 = vld [vmem:[%s5359_s28 + $0x40] sm:$0xff]  ;;  %v211_v30 = vld [vmem:[%s5359_s28 + $0x48] sm:$0xff]  ;;  %v208_v31 = vld [vmem:[%s5359_s28 + $0x30] sm:$0xff] }
  0x12   :  { %v209_v32 = vld [vmem:[%s5359_s28 + $0x38] sm:$0xff]  ;;  %v206_v33 = vld [vmem:[%s5359_s28 + $0x20] sm:$0xff]  ;;  %v207_v34 = vld [vmem:[%s5359_s28 + $0x28] sm:$0xff] }
  0x13   :  { %v204_v35 = vld [vmem:[%s5359_s28 + $0x10] sm:$0xff]  ;;  %v205_v36 = vld [vmem:[%s5359_s28 + $0x18] sm:$0xff]  ;;  %v202_v37 = vld [vmem:[%s5359_s28] sm:$0xff] }
  0x14   :  { %75 = vrot.lane.b32.xlu0 %v2888_v4, %s3627_s22  ;;  %v203_v38 = vld [vmem:[%s5359_s28 + $0x8] sm:$0xff]  ;;  %v228_v58 = vld [vmem:[%s5359_s28 + $0xd0] sm:$0xff]  ;;  %v226_v60 = vld [vmem:[%s5359_s28 + $0xc0] sm:$0xff]  ;;  %s3638_s22 = smov 7  }
  0x15   :  { %v227_v59 = vld [vmem:[%s5359_s28 + $0xc8] sm:$0xff]  ;;  %v225_v63 = vld [vmem:[%s5359_s28 + $0xb8] sm:$0xff]  ;;  %v224_v2 = vld [vmem:[%s5359_s28 + $0xb0] sm:$0xff] }
  0x16   :  { %v180_v22 = vld [vmem:[%s5360_s23 + $0x28] sm:$0xff] }
  0x7e   :  { %v84_v5 = vpop.permute.xlu0 %83  ;;  %v80_v7 = vpop.permute.xlu1 %79 }
  0x7f   :  { %v3769_v11 = vsel %vm90_vm0, %v61_v9, %v80_v7  ;;  %v3795_v20 = vsel %vm90_vm0, %v63_v18, %v84_v5  ;;  %v223_v5 = vld [vmem:[%s5359_s28 + $0xa8] sm:$0xff] }
  0x80   :  { %v97_v21 = vsel %vm96_vm1, %v3795_v20, 0.0  ;;  %v219_v18 = vld [vmem:[%s5359_s28 + $0x88] sm:$0xff] }
  0x82   :  { %v82_v8 = vpop.permute.xlu0 %81  ;;  %v78_v12 = vpop.permute.xlu1 %77 }
  0x83   :  { %v3763_v10 = vsel %vm90_vm0, %v62_v6, %v82_v8  ;;  %v3780_v15 = vsel %vm90_vm0, %v60_v13, %v78_v12  ;;  %v222_v8 = vld [vmem:[%s5359_s28 + $0xa0] sm:$0xff]  ;;  %v221_v13 = vld [vmem:[%s5359_s28 + $0x98] sm:$0xff] }
  0x84   :  { %160 = vrot.lane.b32.xlu0 %v3763_v10, %s3628_s30  ;;  %145 = vrot.lane.b32.xlu1 %v3763_v10, %s3629_s21 }
  0x86   :  { %v76_v16 = vpop.permute.xlu0 %75 }
  0x87   :  { %v3792_v19 = vsel %vm90_vm0, %v59_v17, %v76_v16  ;;  %v220_v17 = vld [vmem:[%s5359_s28 + $0x90] sm:$0xff] }
  0x88   :  { %158 = vrot.lane.b32.xlu0 %v3769_v11, %s3628_s30  ;;  %143 = vrot.lane.b32.xlu1 %v3769_v11, %s3629_s21 }
  0x8c   :  { %156 = vrot.lane.b32.xlu0 %v3780_v15, %s3628_s30  ;;  %141 = vrot.lane.b32.xlu1 %v3780_v15, %s3629_s21 }
  0x90   :  { %154 = vrot.lane.b32.xlu0 %v3792_v19, %s3628_s30  ;;  %139 = vrot.lane.b32.xlu1 %v3792_v19, %s3629_s21 }
  0x94   :  { %162 = vrot.lane.b32.xlu0 %v97_v21, %s3628_s30  ;;  %147 = vrot.lane.b32.xlu1 %v97_v21, %s3629_s21 }
  0x98   :  { %124 = vrot.lane.b32.xlu0 %v3763_v10, %s3631_s3  ;;  %109 = vrot.lane.b32.xlu1 %v3763_v10, %s3632_s20 }
  0x9c   :  { %122 = vrot.lane.b32.xlu0 %v3769_v11, %s3631_s3  ;;  %107 = vrot.lane.b32.xlu1 %v3769_v11, %s3632_s20 }
  0xa0   :  { %126 = vrot.lane.b32.xlu0 %v97_v21, %s3631_s3  ;;  %111 = vrot.lane.b32.xlu1 %v97_v21, %s3632_s20  ;;  %v218_v21 = vld [vmem:[%s5359_s28 + $0x80] sm:$0xff] }
  0xa4   :  { %120 = vrot.lane.b32.xlu0 %v3780_v15, %s3631_s3  ;;  %105 = vrot.lane.b32.xlu1 %v3780_v15, %s3632_s20 }
  0xa8   :  { %118 = vrot.lane.b32.xlu0 %v3792_v19, %s3631_s3  ;;  %103 = vrot.lane.b32.xlu1 %v3792_v19, %s3632_s20 }
  0xac   :  { %306 = vperm.xlu1 %3535, %v217_v23   ;;  %301 = vperm.xlu0 %3536, %v216_v26   ;;  %v181_v23 = vld [vmem:[%s5360_s23 + $0x30] sm:$0xff]  ;;  %v184_v26 = vld [vmem:[%s5360_s23 + $0x48] sm:$0xff] }
  0xb0   :  { %296 = vperm.xlu1 %3535, %v215_v24   ;;  %286 = vperm.xlu0 %3536, %v213_v28   ;;  %v182_v24 = vld [vmem:[%s5360_s23 + $0x38] sm:$0xff] }
  0xb1   :  { %v186_v28 = vld [vmem:[%s5360_s23 + $0x58] sm:$0xff] }
  0xb4   :  { %291 = vperm.xlu1 %3535, %v214_v25   ;;  %276 = vperm.xlu0 %3536, %v211_v30   ;;  %v183_v25 = vld [vmem:[%s5360_s23 + $0x40] sm:$0xff]  ;;  %v188_v30 = vld [vmem:[%s5360_s23 + $0x68] sm:$0xff] }
  0xb8   :  { %281 = vperm.xlu1 %3535, %v212_v27   ;;  %266 = vperm.xlu0 %3536, %v209_v32   ;;  %v185_v27 = vld [vmem:[%s5360_s23 + $0x50] sm:$0xff]  ;;  %v190_v32 = vld [vmem:[%s5360_s23 + $0x78] sm:$0xff] }
  0xbc   :  { %271 = vperm.xlu1 %3535, %v210_v29   ;;  %256 = vperm.xlu0 %3536, %v207_v34   ;;  %v187_v29 = vld [vmem:[%s5360_s23 + $0x60] sm:$0xff]  ;;  %v192_v34 = vld [vmem:[%s5360_s23 + $0x88] sm:$0xff] }
  0xc0   :  { %261 = vperm.xlu1 %3535, %v208_v31   ;;  %246 = vperm.xlu0 %3536, %v205_v36   ;;  %v189_v31 = vld [vmem:[%s5360_s23 + $0x70] sm:$0xff]  ;;  %v194_v36 = vld [vmem:[%s5360_s23 + $0x98] sm:$0xff] }
  0xc4   :  { %251 = vperm.xlu1 %3535, %v206_v33   ;;  %236 = vperm.xlu0 %3536, %v203_v38   ;;  %v191_v33 = vld [vmem:[%s5360_s23 + $0x80] sm:$0xff]  ;;  %v196_v38 = vld [vmem:[%s5360_s23 + $0xa8] sm:$0xff] }
  0xc8   :  { %241 = vperm.xlu1 %3535, %v204_v35   ;;  %361 = vperm.xlu0 %3536, %v228_v58   ;;  %v193_v35 = vld [vmem:[%s5360_s23 + $0x90] sm:$0xff] }
  0xcc   :  { %231 = vperm.xlu1 %3535, %v202_v37   ;;  %351 = vperm.xlu0 %3536, %v226_v60   ;;  %v195_v37 = vld [vmem:[%s5360_s23 + $0xa0] sm:$0xff] }
  0xd0   :  { %356 = vperm.xlu1 %3535, %v227_v59   ;;  %341 = vperm.xlu0 %3536, %v224_v2  }
  0xd4   :  { %346 = vperm.xlu1 %3535, %v225_v63   ;;  %331 = vperm.xlu0 %3536, %v222_v8  }
  0xd8   :  { %336 = vperm.xlu1 %3535, %v223_v5   ;;  %321 = vperm.xlu0 %3536, %v220_v17  }
  0xdc   :  { %326 = vperm.xlu1 %3535, %v221_v13   ;;  %311 = vperm.xlu0 %3536, %v218_v21  }
  0xe0   :  { %316 = vperm.xlu1 %3535, %v219_v18  }
  0xf6   :  { %v161_v39 = vpop.permute.xlu0 %160  ;;  %v146_v40 = vpop.permute.xlu1 %145 }
  0xf7   :  { %v173_v50 = vsel %vm169_vm3, %v146_v40, %v161_v39  ;;  %v197_v39 = vld [vmem:[%s5360_s23 + $0xb0] sm:$0xff]  ;;  %v198_v40 = vld [vmem:[%s5360_s23 + $0xb8] sm:$0xff] }
  0xfa   :  { %v159_v41 = vpop.permute.xlu0 %158  ;;  %v144_v42 = vpop.permute.xlu1 %143 }
  0xfb   :  { %v172_v53 = vsel %vm169_vm3, %v144_v42, %v159_v41  ;;  %v199_v41 = vld [vmem:[%s5360_s23 + $0xc0] sm:$0xff]  ;;  %v200_v42 = vld [vmem:[%s5360_s23 + $0xc8] sm:$0xff] }
  0xfe   :  { %v157_v43 = vpop.permute.xlu0 %156  ;;  %v142_v44 = vpop.permute.xlu1 %141 }
  0xff   :  { %v171_v54 = vsel %vm169_vm3, %v142_v44, %v157_v43  ;;  %v201_v43 = vld [vmem:[%s5360_s23 + $0xd0] sm:$0xff] }
 0x102   :  { %v155_v45 = vpop.permute.xlu0 %154  ;;  %v140_v46 = vpop.permute.xlu1 %139 }
 0x103   :  { %v170_v57 = vsel %vm169_vm3, %v140_v46, %v155_v45 }
 0x106   :  { %v163_v47 = vpop.permute.xlu0 %162  ;;  %v148_v48 = vpop.permute.xlu1 %147 }
 0x107   :  { %v174_v49 = vsel %vm169_vm3, %v148_v48, %v163_v47 }
 0x108   :  { %3253 = vmatpush3.msra.mxu0 %v174_v49 }
 0x109   :  { %3254 = vmatprep.subr.mxu0 %v5351_v14 }
 0x10a   :  { %v125_v51 = vpop.permute.xlu0 %124  ;;  %3255 = vmatpush3.msra.mxu0 %v173_v50  ;;  %v110_v52 = vpop.permute.xlu1 %109 }
 0x10b   :  { %3256 = vmatprep.subr.mxu0 %v5351_v14  ;;  %v137_v1 = vsel %vm133_vm4, %v110_v52, %v125_v51 }
 0x10c   :  { %3257 = vmatpush3.msra.mxu0 %v172_v53 }
 0x10d   :  { %3258 = vmatprep.subr.mxu0 %v5351_v14 }
 0x10e   :  { %v123_v55 = vpop.permute.xlu0 %122  ;;  %3259 = vmatpush3.msra.mxu0 %v171_v54  ;;  %v108_v56 = vpop.permute.xlu1 %107 }
 0x10f   :  { %3260 = vmatprep.subr.mxu0 %v5351_v14  ;;  %v136_v6 = vsel %vm133_vm4, %v108_v56, %v123_v55  ;;  %v836_v55 = vld [vmem:[%s5361_s27 + $0x8] sm:$0xff] }
 0x110   :  { %3261 = vmatpush3.msra.mxu0 %v170_v57  ;;  %2948 = vmatprep.mubr.msk.f32.mxu1 %vm863_vm6, %v836_v55 }
 0x111   :  { %3262 = vmatprep.subr.mxu0 %v5351_v14 }
 0x112   :  { %v127_v61 = vpop.permute.xlu0 %126  ;;  %v112_v62 = vpop.permute.xlu1 %111 }
 0x113   :  { %v138_v0 = vsel %vm133_vm4, %v112_v62, %v127_v61 }
 0x114   :  { %3263 = vmatpush3.msra.mxu0 %v138_v0 }
 0x115   :  { %3264 = vmatprep.subr.mxu0 %v5351_v14 }
 0x116   :  { %v121_v3 = vpop.permute.xlu0 %120  ;;  %3265 = vmatpush3.msra.mxu0 %v137_v1  ;;  %v106_v4 = vpop.permute.xlu1 %105 }
 0x117   :  { %3266 = vmatprep.subr.mxu0 %v5351_v14  ;;  %v135_v7 = vsel %vm133_vm4, %v106_v4, %v121_v3 }
 0x118   :  { %3267 = vmatpush3.msra.mxu0 %v136_v6 }
 0x119   :  { %3268 = vmatprep.subr.mxu0 %v5351_v14 }
 0x11a   :  { %v119_v9 = vpop.permute.xlu0 %118  ;;  %3269 = vmatpush3.msra.mxu0 %v135_v7  ;;  %v104_v12 = vpop.permute.xlu1 %103 }
 0x11b   :  { %3270 = vmatprep.subr.mxu0 %v5351_v14  ;;  %v134_v16 = vsel %vm133_vm4, %v104_v12, %v119_v9 }
 0x11c   :  { %3271 = vmatpush3.msra.mxu0 %v134_v16 }
 0x11d   :  { %3272 = vmatprep.subr.mxu0 %v5351_v14 }
 0x11e   :  { %3273 = vmatpush3.msk.msra.mxu0 %vm96_vm1, %v3795_v20  ;;  %v175_v20 = vld [vmem:[%s5360_s23] sm:$0xff] }
 0x11f   :  { %3274 = vmatprep.subr.mxu0 %v5351_v14 }
 0x120   :  { %3275 = vmatpush3.msra.mxu0 %v3763_v10  ;;  %v176_v10 = vld [vmem:[%s5360_s23 + $0x8] sm:$0xff] }
 0x121   :  { %3276 = vmatprep.subr.mxu0 %v5351_v14 }
 0x122   :  { %3277 = vmatpush3.msra.mxu0 %v3769_v11  ;;  %v177_v11 = vld [vmem:[%s5360_s23 + $0x10] sm:$0xff] }
 0x123   :  { %3278 = vmatprep.subr.mxu0 %v5351_v14 }
 0x124   :  { %3279 = vmatpush3.msra.mxu0 %v3780_v15  ;;  %v178_v15 = vld [vmem:[%s5360_s23 + $0x18] sm:$0xff] }
 0x125   :  { %3280 = vmatprep.subr.mxu0 %v5351_v14 }
 0x126   :  { %3281 = vmatpush3.msra.mxu0 %v3792_v19  ;;  %v179_v19 = vld [vmem:[%s5360_s23 + $0x20] sm:$0xff] }
 0x127   :  { %3283 = vmatmul.mubr.msk.f32.vlgmr.msra.gmra.mxu0 %vm364_vm5, %v175_v20  ;;  %v307_v59 = vpop.permute.xlu1 %306  ;;  %v302_v0 = vpop.permute.xlu0 %301 }
 0x128   :  { %3285 = vmatprep.mubr.msk.f32.mxu0 %vm3633_vm2, %v5351_v14 }
 0x12b   :  { %3286 = vmatmul.mubr.msk.f32.gmra.mxu0 %vm364_vm5, %v176_v10  ;;  %v297_v63 = vpop.permute.xlu1 %296  ;;  %v287_v5 = vpop.permute.xlu0 %286 }
 0x12c   :  { %3288 = vmatprep.mubr.msk.f32.mxu0 %vm3633_vm2, %v5351_v14 }
 0x12f   :  { %3289 = vmatmul.mubr.msk.f32.gmra.mxu0 %vm364_vm5, %v177_v11  ;;  %v292_v4 = vpop.permute.xlu1 %291  ;;  %v277_v12 = vpop.permute.xlu0 %276 }
 0x130   :  { %3291 = vmatprep.mubr.msk.f32.mxu0 %vm3633_vm2, %v5351_v14 }
 0x133   :  { %3292 = vmatmul.mubr.msk.f32.gmra.mxu0 %vm364_vm5, %v178_v15  ;;  %v282_v9 = vpop.permute.xlu1 %281  ;;  %v267_v21 = vpop.permute.xlu0 %266 }
 0x134   :  { %3294 = vmatprep.mubr.msk.f32.mxu0 %vm3633_vm2, %v5351_v14 }
 0x137   :  { %3295 = vmatmul.mubr.msk.f32.gmra.mxu0 %vm364_vm5, %v179_v19  ;;  %v272_v18 = vpop.permute.xlu1 %271 }
 0x138   :  { %3297 = vmatprep.mubr.msk.f32.mxu0 %vm3633_vm2, %v5351_v14 }
 0x13b   :  { %3298 = vmatmul.mubr.msk.f32.gmra.mxu0 %vm364_vm5, %v180_v22 }
 0x13c   :  { %3300 = vmatprep.mubr.msk.f32.mxu0 %vm3633_vm2, %v5351_v14 }
 0x13f   :  { %3301 = vmatmul.mubr.msk.f32.gmra.mxu0 %vm364_vm5, %v181_v23 }
 0x140   :  { %3303 = vmatprep.mubr.msk.f32.mxu0 %vm3633_vm2, %v5351_v14 }
 0x143   :  { %3304 = vmatmul.mubr.msk.f32.gmra.mxu0 %vm364_vm5, %v182_v24  ;;  %v262_v24 = vpop.permute.xlu1 %261 }
 0x144   :  { %3306 = vmatprep.mubr.msk.f32.mxu0 %vm3633_vm2, %v5351_v14 }
 0x147   :  { %3307 = vmatmul.mubr.msk.f32.gmra.mxu0 %vm364_vm5, %v183_v25  ;;  %v257_v25 = vpop.permute.xlu0 %256 }
 0x148   :  { %3309 = vmatprep.mubr.msk.f32.mxu0 %vm3633_vm2, %v5351_v14 }
 0x14b   :  { %3310 = vmatmul.mubr.msk.f32.gmra.mxu0 %vm364_vm5, %v184_v26 }
 0x14c   :  { %3312 = vmatprep.mubr.msk.f32.mxu0 %vm3633_vm2, %v5351_v14 }
 0x14f   :  { %3313 = vmatmul.mubr.msk.f32.gmra.mxu0 %vm364_vm5, %v185_v27 }
 0x150   :  { %3315 = vmatprep.mubr.msk.f32.mxu0 %vm3633_vm2, %v5351_v14 }
 0x153   :  { %3316 = vmatmul.mubr.msk.f32.gmra.mxu0 %vm364_vm5, %v186_v28 }
 0x154   :  { %3318 = vmatprep.mubr.msk.f32.mxu0 %vm3633_vm2, %v5351_v14 }
 0x157   :  { %3319 = vmatmul.mubr.msk.f32.gmra.mxu0 %vm364_vm5, %v187_v29 }
 0x158   :  { %3321 = vmatprep.mubr.msk.f32.mxu0 %vm3633_vm2, %v5351_v14 }
 0x15b   :  { %3322 = vmatmul.mubr.msk.f32.gmra.mxu0 %vm364_vm5, %v188_v30 }
 0x15c   :  { %3324 = vmatprep.mubr.msk.f32.mxu0 %vm3633_vm2, %v5351_v14 }
 0x15f   :  { %3325 = vmatmul.mubr.msk.f32.gmra.mxu0 %vm364_vm5, %v189_v31 }
 0x160   :  { %3327 = vmatprep.mubr.msk.f32.mxu0 %vm3633_vm2, %v5351_v14 }
 0x163   :  { %3328 = vmatmul.mubr.msk.f32.gmra.mxu0 %vm364_vm5, %v190_v32 }
 0x164   :  { %3330 = vmatprep.mubr.msk.f32.mxu0 %vm3633_vm2, %v5351_v14 }
 0x167   :  { %3331 = vmatmul.mubr.msk.f32.gmra.mxu0 %vm364_vm5, %v191_v33 }
 0x168   :  { %3333 = vmatprep.mubr.msk.f32.mxu0 %vm3633_vm2, %v5351_v14 }
 0x16b   :  { %3334 = vmatmul.mubr.msk.f32.gmra.mxu0 %vm364_vm5, %v192_v34 }
 0x16c   :  { %3336 = vmatprep.mubr.msk.f32.mxu0 %vm3633_vm2, %v5351_v14 }
 0x16f   :  { %3337 = vmatmul.mubr.msk.f32.gmra.mxu0 %vm364_vm5, %v193_v35 }
 0x170   :  { %3339 = vmatprep.mubr.msk.f32.mxu0 %vm3633_vm2, %v5351_v14 }
 0x173   :  { %3340 = vmatmul.mubr.msk.f32.gmra.mxu0 %vm364_vm5, %v194_v36  ;;  %v252_v36 = vpop.permute.xlu1 %251 }
 0x174   :  { %3342 = vmatprep.mubr.msk.f32.mxu0 %vm3633_vm2, %v5351_v14 }
 0x177   :  { %3343 = vmatmul.mubr.msk.f32.gmra.mxu0 %vm364_vm5, %v195_v37  ;;  %v247_v37 = vpop.permute.xlu0 %246 }
 0x178   :  { %3345 = vmatprep.mubr.msk.f32.mxu0 %vm3633_vm2, %v5351_v14 }
 0x17b   :  { %3346 = vmatmul.mubr.msk.f32.gmra.mxu0 %vm364_vm5, %v196_v38  ;;  %v237_v55 = vpop.permute.xlu0 %236 }
 0x17c   :  { %3348 = vmatprep.mubr.msk.f32.mxu0 %vm3633_vm2, %v5351_v14 }
 0x17f   :  { %3349 = vmatmul.mubr.msk.f32.gmra.mxu0 %vm364_vm5, %v197_v39 }
 0x180   :  { %3351 = vmatprep.mubr.msk.f32.mxu0 %vm3633_vm2, %v5351_v14 }
 0x183   :  { %3352 = vmatmul.mubr.msk.f32.gmra.mxu0 %vm364_vm5, %v198_v40 }
 0x184   :  { %3354 = vmatprep.mubr.msk.f32.mxu0 %vm3633_vm2, %v5351_v14 }
 0x187   :  { %3355 = vmatmul.mubr.msk.f32.gmra.mxu0 %vm364_vm5, %v199_v41 }
 0x188   :  { %3357 = vmatprep.mubr.msk.f32.mxu0 %vm3633_vm2, %v5351_v14 }
 0x18b   :  { %3358 = vmatmul.mubr.msk.f32.gmra.mxu0 %vm364_vm5, %v200_v42 }
 0x18c   :  { %3360 = vmatprep.mubr.msk.f32.mxu0 %vm3633_vm2, %v5351_v14 }
 0x18f   :  { %3361 = vmatmul.mubr.msk.f32.gmra.mxu0 %vm364_vm5, %v201_v43 }
 0x1e7   :  { %v4089_v44 = vpop.f32.mrf.mxu0 }
 0x1e9   :  { %v3284_v45 = vpop.f32.mrf.mxu0 }
 0x1eb   :  { %v4091_v46 = vpop.f32.mrf.mxu0 }
 0x1ed   :  { %v3287_v47 = vpop.f32.mrf.mxu0 }
 0x1ef   :  { %v4093_v48 = vpop.f32.mrf.mxu0 }
 0x1f1   :  { %v3290_v49 = vpop.f32.mrf.mxu0 }
 0x1f3   :  { %v4095_v50 = vpop.f32.mrf.mxu0 }
 0x1f5   :  { %v3293_v51 = vpop.f32.mrf.mxu0 }
 0x1f7   :  { %v4097_v52 = vpop.f32.mrf.mxu0 }
 0x1f9   :  { %v3296_v53 = vpop.f32.mrf.mxu0 }
 0x1fa   :  { %v242_v53 = vpop.permute.xlu1 %241 }
 0x1fb   :  { %v4099_v54 = vpop.f32.mrf.mxu0 }
 0x1fd   :  { %v3299_v56 = vpop.f32.mrf.mxu0 }
 0x1fe   :  { %v4138_v56 = vadd.f32 %v4099_v54, %v257_v25 }
 0x1ff   :  { %v542_v57 = vpop.f32.mrf.mxu0 }
 0x200   :  { %v4132_v47 = vadd.f32 %v542_v57, %v262_v24  ;;  %v683_v54 = vmul.f32 1.442695, %v4138_v56  ;;  %vm651_vm5 = vcmp.gt.f32.partialorder %v4138_v56, 0.0 }
 0x201   :  { %v3302_v58 = vpop.f32.mrf.mxu0 }
 0x202   :  { %v685_v57 = vmul.f32 1.442695, %v4132_v47  ;;  %vm652_vm4 = vcmp.gt.f32.partialorder %v4132_v47, 0.0 }
 0x203   :  { %v547_v60 = vpop.f32.mrf.mxu0 }
 0x204   :  { %v4129_v42 = vadd.f32 %v547_v60, %v267_v21  ;;  %v4142_v60 = vadd.f32 %v4097_v52, %v252_v36 }
 0x205   :  { %v3305_v61 = vpop.f32.mrf.mxu0 }
 0x206   :  { %v687_v58 = vmul.f32 1.442695, %v4129_v42  ;;  %v4146_v61 = vadd.f32 %v4091_v46, %v237_v55  ;;  %vm653_vm15 = vcmp.gt.f32.partialorder %v4129_v42, 0.0 }
 0x207   :  { %v552_v62 = vpop.f32.mrf.mxu0 }
 0x208   :  { %v4123_v38 = vadd.f32 %v552_v62, %v272_v18 }
 0x209   :  { %v3308_v1 = vpop.f32.mrf.mxu0 }
 0x20a   :  { %v689_v49 = vmul.f32 1.442695, %v4123_v38  ;;  %vm654_vm14 = vcmp.gt.f32.partialorder %v4123_v38, 0.0 }
 0x20b   :  { %v557_v2 = vpop.f32.mrf.mxu0 }
 0x20c   :  { %v4119_v33 = vadd.f32 %v557_v2, %v277_v12  ;;  %v4155_v2 = vadd.f32 %v4093_v48, %v242_v53 }
 0x20d   :  { %v3311_v3 = vpop.f32.mrf.mxu0 }
 0x20e   :  { %v691_v43 = vmul.f32 1.442695, %v4119_v33  ;;  %v232_v3 = vpop.permute.xlu1 %231  ;;  %vm655_vm13 = vcmp.gt.f32.partialorder %v4119_v33, 0.0  ;;  %vm648_vm0 = vcmp.gt.f32.partialorder %v4155_v2, 0.0 }
 0x20f   :  { %v562_v6 = vpop.f32.mrf.mxu0  ;;  %v4163_v48 = vadd.f32 %v4089_v44, %v232_v3 }
 0x210   :  { %v4114_v28 = vadd.f32 %v562_v6, %v282_v9  ;;  %v675_v6 = vmul.f32 1.442695, %v4146_v61 }
 0x211   :  { %v3314_v7 = vpop.f32.mrf.mxu0  ;;  %v673_v44 = vmul.f32 1.442695, %v4163_v48 }
 0x212   :  { %v693_v39 = vmul.f32 1.442695, %v4114_v28  ;;  %vm656_vm12 = vcmp.gt.f32.partialorder %v4114_v28, 0.0 }
 0x213   :  { %v567_v8 = vpop.f32.mrf.mxu0 }
 0x214   :  { %v4109_v19 = vadd.f32 %v567_v8, %v287_v5 }
 0x215   :  { %v3317_v13 = vpop.f32.mrf.mxu0 }
 0x216   :  { %v695_v31 = vmul.f32 1.442695, %v4109_v19  ;;  %v677_v13 = vmul.f32 1.442695, %v4155_v2  ;;  %vm657_vm11 = vcmp.gt.f32.partialorder %v4109_v19, 0.0 }
 0x217   :  { %v572_v16 = vpop.f32.mrf.mxu0 }
 0x218   :  { %v4107_v15 = vadd.f32 %v572_v16, %v292_v4  ;;  %v681_v4 = vmul.f32 1.442695, %v4142_v60 }
 0x219   :  { %v3320_v17 = vpop.f32.mrf.mxu0 }
 0x21a   :  { %v697_v29 = vmul.f32 1.442695, %v4107_v15  ;;  %vm658_vm10 = vcmp.gt.f32.partialorder %v4107_v15, 0.0 }
 0x21b   :  { %v577_v20 = vpop.f32.mrf.mxu0 }
 0x21c   :  { %v4105_v10 = vadd.f32 %v577_v20, %v297_v63 }
 0x21d   :  { %v3323_v11 = vpop.f32.mrf.mxu0 }
 0x21e   :  { %v699_v22 = vmul.f32 1.442695, %v4105_v10  ;;  %v4166_v11 = vpop.permute.xlu0 %361  ;;  %vm659_vm9 = vcmp.gt.f32.partialorder %v4105_v10, 0.0 }
 0x21f   :  { %v582_v23 = vpop.f32.mrf.mxu0 }
 0x220   :  { %v4112_v26 = vadd.f32 %v582_v23, %v302_v0  ;;  %3537 = vpow2.f32 %v699_v22  ;;  %v4151_v0 = vadd.f32 %v4095_v50, %v247_v37  ;;  %v4176_v37 = vpop.permute.xlu1 %356 }
 0x221   :  { %v3326_v27 = vpop.f32.mrf.mxu0 }
 0x222   :  { %v701_v30 = vmul.f32 1.442695, %v4112_v26  ;;  %v679_v8 = vmul.f32 1.442695, %v4151_v0  ;;  %vm660_vm7 = vcmp.gt.f32.partialorder %v4112_v26, 0.0  ;;  %v352_v55 = vpop.permute.xlu0 %351 }
 0x223   :  { %v587_v32 = vpop.f32.mrf.mxu0 }
 0x224   :  { %3539 = vpow2.f32 %v701_v30  ;;  %v4121_v34 = vadd.f32 %v587_v32, %v307_v59 }
 0x225   :  { %v3329_v35 = vpop.f32.mrf.mxu0  ;;  %3541 = vpow2.f32 %v697_v29 }
 0x226   :  { %v703_v40 = vmul.f32 1.442695, %v4121_v34  ;;  %3543 = vpow2.f32 %v695_v31  ;;  %vm661_vm8 = vcmp.gt.f32.partialorder %v4121_v34, 0.0 }
 0x227   :  { %v4127_v41 = vpop.f32.mrf.mxu0 }
 0x228   :  { %3545 = vpow2.f32 %v703_v40 }
 0x229   :  { %v3332_v45 = vpop.f32.mrf.mxu0  ;;  %3547 = vpow2.f32 %v693_v39 }
 0x22a   :  { %3549 = vpow2.f32 %v691_v43 }
 0x22b   :  { %v4135_v51 = vpop.f32.mrf.mxu0  ;;  %3551 = vpow2.f32 %v689_v49 }
 0x22c   :  { %3553 = vpow2.f32 %v687_v58 }
 0x22d   :  { %v3335_v59 = vpop.f32.mrf.mxu0  ;;  %v3538_v63 = vpop.eup %3537  ;;  %3555 = vpow2.f32 %v685_v57 }
 0x22e   :  { %3557 = vpow2.f32 %v683_v54  ;;  %v2934_v9 = vadd.f32 -1.0, %v3538_v63 }
 0x22f   :  { %v4148_v62 = vpop.f32.mrf.mxu0  ;;  %3559 = vpow2.f32 %v681_v4 }
 0x230   :  { %3561 = vpow2.f32 %v675_v6  ;;  %v767_v25 = vmul.f32 1.6732632, %v2934_v9 }
 0x231   :  { %v3540_v1 = vpop.eup %3539  ;;  %v3338_v52 = vpop.f32.mrf.mxu0  ;;  %3563 = vpow2.f32 %v679_v8 }
 0x232   :  { %v2935_v46 = vadd.f32 -1.0, %v3540_v1  ;;  %v3542_v5 = vpop.eup %3541  ;;  %3565 = vpow2.f32 %v677_v13  ;;  %v794_v45 = vsel %vm659_vm9, %v4105_v10, %v767_v25  ;;  %vm647_vm9 = vcmp.gt.f32.partialorder %v4146_v61, 0.0 }
 0x233   :  { %v4159_v7 = vpop.f32.mrf.mxu0  ;;  %v3544_v50 = vpop.eup %3543  ;;  %v2933_v17 = vadd.f32 -1.0, %v3542_v5  ;;  %3567 = vpow2.f32 %v673_v44  ;;  %v821_v10 = vmul.f32 1.050701, %v794_v45 }
 0x234   :  { %v768_v21 = vmul.f32 1.6732632, %v2935_v46  ;;  %v2932_v23 = vadd.f32 -1.0, %v3544_v50  ;;  %v347_v46 = vpop.permute.xlu1 %346 }
 0x235   :  { %v3546_v12 = vpop.eup %3545  ;;  %v3341_v16 = vpop.f32.mrf.mxu0  ;;  %v766_v35 = vmul.f32 1.6732632, %v2933_v17 }
 0x236   :  { %v2936_v18 = vadd.f32 -1.0, %v3546_v12  ;;  %v3548_v20 = vpop.eup %3547  ;;  %v795_v32 = vsel %vm660_vm7, %v4112_v26, %v768_v21  ;;  %v765_v49 = vmul.f32 1.6732632, %v2932_v23  ;;  %v342_v12 = vpop.permute.xlu0 %341  ;;  %vm649_vm7 = vcmp.gt.f32.partialorder %v4151_v0, 0.0 }
 0x237   :  { %v4168_v22 = vpop.f32.mrf.mxu0  ;;  %v3550_v27 = vpop.eup %3549  ;;  %v2931_v30 = vadd.f32 -1.0, %v3548_v20  ;;  %v822_v26 = vmul.f32 1.050701, %v795_v32  ;;  %v793_v59 = vsel %vm658_vm10, %v4107_v15, %v766_v35  ;;  %vm646_vm10 = vcmp.gt.f32.partialorder %v4163_v48, 0.0 }
 0x238   :  { %v769_v24 = vmul.f32 1.6732632, %v2936_v18  ;;  %v3552_v36 = vpop.eup %3551  ;;  %v2930_v43 = vadd.f32 -1.0, %v3550_v27  ;;  %v792_v52 = vsel %vm657_vm11, %v4109_v19, %v765_v49  ;;  %v820_v15 = vmul.f32 1.050701, %v793_v59 }
 0x239   :  { %v3344_v29 = vpop.f32.mrf.mxu0  ;;  %v3554_v53 = vpop.eup %3553  ;;  %v2929_v58 = vadd.f32 -1.0, %v3552_v36  ;;  %v764_v57 = vmul.f32 1.6732632, %v2931_v30  ;;  %v819_v19 = vmul.f32 1.050701, %v792_v52 }
 0x23a   :  { %v796_v31 = vsel %vm661_vm8, %v4121_v34, %v769_v24  ;;  %v3556_v63 = vpop.eup %3555  ;;  %v2928_v1 = vadd.f32 -1.0, %v3554_v53  ;;  %v763_v3 = vmul.f32 1.6732632, %v2930_v43  ;;  %v337_v29 = vpop.permute.xlu1 %336  ;;  %vm650_vm8 = vcmp.gt.f32.partialorder %v4142_v60, 0.0 }
 0x23b   :  { %v4178_v39 = vpop.f32.mrf.mxu0  ;;  %v823_v40 = vmul.f32 1.050701, %v796_v31  ;;  %v3558_v4 = vpop.eup %3557  ;;  %v2927_v6 = vadd.f32 -1.0, %v3556_v63  ;;  %v791_v50 = vsel %vm656_vm12, %v4114_v28, %v764_v57  ;;  %v762_v8 = vmul.f32 1.6732632, %v2929_v58 }
 0x23c   :  { %v3560_v9 = vpop.eup %3559  ;;  %v2926_v17 = vadd.f32 -1.0, %v3558_v4  ;;  %v790_v18 = vsel %vm655_vm13, %v4119_v33, %v763_v3  ;;  %v761_v21 = vmul.f32 1.6732632, %v2928_v1  ;;  %v818_v28 = vmul.f32 1.050701, %v791_v50 }
 0x23d   :  { %v3347_v34 = vpop.f32.mrf.mxu0  ;;  %907 = vmatpush1.msra.mxu1 %v823_v40  ;;  %v3562_v16 = vpop.eup %3561  ;;  %v2925_v25 = vadd.f32 -1.0, %v3560_v9  ;;  %v789_v27 = vsel %vm654_vm14, %v4123_v38, %v762_v8  ;;  %v760_v44 = vmul.f32 1.6732632, %v2927_v6  ;;  %v817_v33 = vmul.f32 1.050701, %v790_v18 }
 0x23e   :  { %908 = vmatprep.subr.mxu1 %v5351_v14  ;;  %v3564_v20 = vpop.eup %3563  ;;  %v788_v35 = vsel %vm653_vm15, %v4129_v42, %v761_v21  ;;  %v759_v36 = vmul.f32 1.6732632, %v2926_v17  ;;  %v332_v38 = vpop.permute.xlu0 %331  ;;  %v816_v45 = vmul.f32 1.050701, %v789_v27  ;;  %v2922_v53 = vadd.f32 -1.0, %v3562_v16 }
 0x23f   :  { %v622_v54 = vpop.f32.mrf.mxu0  ;;  %909 = vmatpush1.msra.mxu1 %v822_v26  ;;  %v3566_v24 = vpop.eup %3565  ;;  %v2924_v31 = vadd.f32 -1.0, %v3564_v20  ;;  %v758_v26 = vmul.f32 1.6732632, %v2925_v25  ;;  %v815_v57 = vmul.f32 1.050701, %v788_v35 }
 0x240   :  { %910 = vmatprep.subr.mxu1 %v5351_v14  ;;  %v2923_v40 = vadd.f32 -1.0, %v3566_v24  ;;  %v3568_v49 = vpop.eup %3567  ;;  %v4208_v42 = vadd.f32 %v622_v54, %v342_v12  ;;  %v327_v1 = vpop.permute.xlu1 %326  ;;  %v755_v9 = vmul.f32 1.6732632, %v2922_v53  ;;  %v4227_v12 = vadd.f32 %v4168_v22, %v332_v38 }
 0x241   :  { %v3350_v5 = vpop.f32.mrf.mxu0  ;;  %911 = vmatpush1.msra.mxu1 %v821_v10  ;;  %v786_v10 = vsel %vm651_vm5, %v4138_v56, %v759_v36  ;;  %v2921_v4 = vadd.f32 -1.0, %v3568_v49  ;;  %v785_v56 = vsel %vm650_vm8, %v4142_v60, %v758_v26  ;;  %v4240_v22 = vadd.f32 %v4159_v7, %v327_v1 }
 0x242   :  { %912 = vmatprep.subr.mxu1 %v5351_v14  ;;  %v756_v3 = vmul.f32 1.6732632, %v2923_v40  ;;  %v717_v6 = vmul.f32 1.442695, %v4208_v42  ;;  %v813_v8 = vmul.f32 1.050701, %v786_v10  ;;  %v782_v7 = vsel %vm647_vm9, %v4146_v61, %v755_v9 }
 0x243   :  { %v627_v13 = vpop.f32.mrf.mxu0  ;;  %913 = vmatpush1.msra.mxu1 %v820_v15  ;;  %v322_v15 = vpop.permute.xlu0 %321  ;;  %v754_v17 = vmul.f32 1.6732632, %v2921_v4  ;;  %v711_v25 = vmul.f32 1.442695, %v4240_v22  ;;  %v809_v27 = vmul.f32 1.050701, %v782_v7 }
 0x244   :  { %914 = vmatprep.subr.mxu1 %v5351_v14  ;;  %v4203_v34 = vadd.f32 %v627_v13, %v347_v46  ;;  %v4219_v46 = vadd.f32 %v4178_v39, %v337_v29  ;;  %v783_v16 = vsel %vm648_vm0, %v4155_v2, %v756_v3  ;;  %v4247_v20 = vadd.f32 %v4148_v62, %v322_v15 }
 0x245   :  { %v3353_v23 = vpop.f32.mrf.mxu0  ;;  %915 = vmatpush1.msra.mxu1 %v819_v19  ;;  %v812_v19 = vmul.f32 1.050701, %v785_v56  ;;  %v713_v2 = vmul.f32 1.442695, %v4227_v12  ;;  %v781_v62 = vsel %vm646_vm10, %v4163_v48, %v754_v17  ;;  %vm668_vm15 = vcmp.gt.f32.partialorder %v4208_v42, 0.0 }
 0x246   :  { %916 = vmatprep.subr.mxu1 %v5351_v14  ;;  %v719_v5 = vmul.f32 1.442695, %v4203_v34  ;;  %v709_v61 = vmul.f32 1.442695, %v4247_v20  ;;  %vm669_vm14 = vcmp.gt.f32.partialorder %v4203_v34, 0.0  ;;  %vm667_vm0 = vcmp.gt.f32.partialorder %v4219_v46, 0.0 }
 0x247   :  { %v632_v30 = vpop.f32.mrf.mxu0  ;;  %917 = vmatpush1.msra.mxu1 %v818_v28  ;;  %v312_v23 = vpop.permute.xlu0 %311  ;;  %v810_v28 = vmul.f32 1.050701, %v783_v16  ;;  %vm665_vm5 = vcmp.gt.f32.partialorder %v4240_v22, 0.0  ;;  %vm1091_vm10 = vcmask 1041408  }
 0x248   :  { %v4197_v32 = vadd.f32 %v632_v30, %v352_v55  ;;  %918 = vmatprep.subr.mxu1 %v5351_v14  ;;  %v787_v55 = vsel %vm652_vm4, %v4132_v47, %v760_v44  ;;  %v757_v47 = vmul.f32 1.6732632, %v2924_v31  ;;  %v4260_v44 = vadd.f32 %v4127_v41, %v312_v23 }
 0x249   :  { %v3356_v43 = vpop.f32.mrf.mxu0  ;;  %919 = vmatpush1.msra.mxu1 %v817_v33  ;;  %v814_v52 = vmul.f32 1.050701, %v787_v55  ;;  %vm666_vm4 = vcmp.gt.f32.partialorder %v4227_v12, 0.0 }
 0x24a   :  { %920 = vmatprep.subr.mxu1 %v5351_v14  ;;  %v721_v58 = vmul.f32 1.442695, %v4197_v32  ;;  %v784_v60 = vsel %vm649_vm7, %v4151_v0, %v757_v47  ;;  %v317_v0 = vpop.permute.xlu1 %316  ;;  %v705_v48 = vmul.f32 1.442695, %v4260_v44  ;;  %vm670_vm13 = vcmp.gt.f32.partialorder %v4197_v32, 0.0 }
 0x24b   :  { %v637_v59 = vpop.f32.mrf.mxu0  ;;  %921 = vmatpush1.msra.mxu1 %v816_v45  ;;  %v811_v21 = vmul.f32 1.050701, %v784_v60  ;;  %v4254_v24 = vadd.f32 %v4135_v51, %v317_v0  ;;  %v808_v51 = vmul.f32 1.050701, %v781_v62  ;;  %vm664_vm7 = vcmp.gt.f32.partialorder %v4247_v20, 0.0  ;;  %v835_v62 = vld [vmem:[%s5361_s27] sm:$0xff] }
 0x24c   :  { %v4213_v63 = vadd.f32 %v637_v59, %v4176_v37  ;;  %922 = vmatprep.subr.mxu1 %v5351_v14  ;;  %3569 = vpow2.f32 %v721_v58  ;;  %vm662_vm9 = vcmp.gt.f32.partialorder %v4260_v44, 0.0 }
 0x24d   :  { %v3359_v54 = vpop.f32.mrf.mxu0  ;;  %923 = vmatpush1.msra.mxu1 %v815_v57  ;;  %v707_v29 = vmul.f32 1.442695, %v4254_v24  ;;  %vm663_vm8 = vcmp.gt.f32.partialorder %v4254_v24, 0.0 }
 0x24e   :  { %v723_v37 = vmul.f32 1.442695, %v4213_v63  ;;  %924 = vmatprep.subr.mxu1 %v5351_v14  ;;  %vm671_vm11 = vcmp.gt.f32.partialorder %v4213_v63, 0.0 }
 0x24f   :  { %v642_v50 = vpop.f32.mrf.mxu0  ;;  %925 = vmatpush1.msra.mxu1 %v814_v52 }
 0x250   :  { %3571 = vpow2.f32 %v723_v37  ;;  %v4230_v39 = vadd.f32 %v642_v50, %v4166_v11  ;;  %926 = vmatprep.subr.mxu1 %v5351_v14  ;;  %v715_v11 = vmul.f32 1.442695, %v4219_v46 }
 0x251   :  { %v3362_v13 = vpop.f32.mrf.mxu0  ;;  %927 = vmatpush1.msra.mxu1 %v813_v8  ;;  %3573 = vpow2.f32 %v719_v5 }
 0x252   :  { %v725_v18 = vmul.f32 1.442695, %v4230_v39  ;;  %928 = vmatprep.subr.mxu1 %v5351_v14  ;;  %3575 = vpow2.f32 %v717_v6  ;;  %vm672_vm12 = vcmp.gt.f32.partialorder %v4230_v39, 0.0 }
 0x253   :  { %929 = vmatpush1.msra.mxu1 %v812_v19 }
 0x254   :  { %3577 = vpow2.f32 %v725_v18  ;;  %930 = vmatprep.subr.mxu1 %v5351_v14 }
 0x255   :  { %931 = vmatpush1.msra.mxu1 %v811_v21  ;;  %3579 = vpow2.f32 %v715_v11 }
 0x256   :  { %932 = vmatprep.subr.mxu1 %v5351_v14  ;;  %3581 = vpow2.f32 %v713_v2 }
 0x257   :  { %933 = vmatpush1.msra.mxu1 %v810_v28  ;;  %3583 = vpow2.f32 %v711_v25 }
 0x258   :  { %934 = vmatprep.subr.mxu1 %v5351_v14  ;;  %3585 = vpow2.f32 %v709_v61  ;;  %v837_v61 = vld [vmem:[%s5361_s27 + $0x10] sm:$0xff] }
 0x259   :  { %935 = vmatpush1.msra.mxu1 %v809_v27  ;;  %v3570_v30 = vpop.eup %3569  ;;  %3587 = vpow2.f32 %v707_v29  ;;  %v838_v27 = vld [vmem:[%s5361_s27 + $0x18] sm:$0xff]  ;;  %v840_v29 = vld [vmem:[%s5361_s27 + $0x28] sm:$0xff] }
 0x25a   :  { %936 = vmatprep.subr.mxu1 %v5351_v14  ;;  %3589 = vpow2.f32 %v705_v48  ;;  %v2945_v36 = vadd.f32 -1.0, %v3570_v30  ;;  %v1044_v30 = vld [vmem:[%s5331_s4 + $0x18] sm:$0xff]  ;;  %v839_v48 = vld [vmem:[%s5361_s27 + $0x20] sm:$0xff] }
 0x25b   :  { %937 = vmatpush1.msra.mxu1 %v808_v51  ;;  %v1045_v51 = vld [vmem:[%s5331_s4 + $0x20] sm:$0xff] }
 0x25c   :  { %948 = vmatprep.subr.mxu1 %v5351_v14  ;;  %v778_v26 = vmul.f32 1.6732632, %v2945_v36  ;;  %v843_v36 = vld [vmem:[%s5361_s27 + $0x40] sm:$0xff] }
 0x25d   :  { %v3572_v41 = vpop.eup %3571 }
 0x25e   :  { %v2946_v33 = vadd.f32 -1.0, %v3572_v41  ;;  %v3574_v31 = vpop.eup %3573  ;;  %v805_v3 = vsel %vm670_vm13, %v4197_v32, %v778_v26  ;;  %v1043_v41 = vld [vmem:[%s5331_s4 + $0x10] sm:$0xff]  ;;  %v851_v26 = vld [vmem:[%s5361_s27 + $0x80] sm:$0xff]  ;;  %vm1623_vm13 = vcmask 654336  }
 0x25f   :  { %v3576_v35 = vpop.eup %3575  ;;  %v2944_v38 = vadd.f32 -1.0, %v3574_v31  ;;  %v832_v50 = vmul.f32 1.050701, %v805_v3  ;;  %v841_v31 = vld [vmem:[%s5361_s27 + $0x30] sm:$0xff]  ;;  %v862_v3 = vld [vmem:[%s5361_s27 + $0xd8] sm:$0xff] }
 0x260   :  { %v779_v45 = vmul.f32 1.6732632, %v2946_v33  ;;  %v2943_v53 = vadd.f32 -1.0, %v3576_v35  ;;  %v842_v33 = vld [vmem:[%s5361_s27 + $0x38] sm:$0xff]  ;;  %v844_v35 = vld [vmem:[%s5361_s27 + $0x48] sm:$0xff] }
 0x261   :  { %v3578_v40 = vpop.eup %3577  ;;  %v777_v47 = vmul.f32 1.6732632, %v2944_v38  ;;  %v845_v38 = vld [vmem:[%s5361_s27 + $0x50] sm:$0xff] }
 0x262   :  { %v2947_v43 = vadd.f32 -1.0, %v3578_v40  ;;  %v3580_v49 = vpop.eup %3579  ;;  %v806_v10 = vsel %vm671_vm11, %v4213_v63, %v779_v45  ;;  %v776_v4 = vmul.f32 1.6732632, %v2943_v53  ;;  %v846_v40 = vld [vmem:[%s5361_s27 + $0x58] sm:$0xff]  ;;  %v847_v45 = vld [vmem:[%s5361_s27 + $0x60] sm:$0xff]  ;;  %v849_v53 = vld [vmem:[%s5361_s27 + $0x70] sm:$0xff] }
 0x263   :  { %v3582_v58 = vpop.eup %3581  ;;  %v2942_v59 = vadd.f32 -1.0, %v3580_v49  ;;  %v833_v37 = vmul.f32 1.050701, %v806_v10  ;;  %v804_v15 = vsel %vm669_vm14, %v4203_v34, %v777_v47  ;;  %v850_v49 = vld [vmem:[%s5361_s27 + $0x78] sm:$0xff]  ;;  %v855_v10 = vld [vmem:[%s5361_s27 + $0xa0] sm:$0xff]  ;;  %vm1048_vm11 = vcmask 408576  }
 0x264   :  { %v780_v55 = vmul.f32 1.6732632, %v2947_v43  ;;  %v3584_v1 = vpop.eup %3583  ;;  %v2941_v52 = vadd.f32 -1.0, %v3582_v58  ;;  %v803_v32 = vsel %vm668_vm15, %v4208_v42, %v776_v4  ;;  %v831_v60 = vmul.f32 1.050701, %v804_v15  ;;  %v848_v43 = vld [vmem:[%s5361_s27 + $0x68] sm:$0xff] }
 0x265   :  { %v3586_v5 = vpop.eup %3585  ;;  %v2940_v56 = vadd.f32 -1.0, %v3584_v1  ;;  %v775_v63 = vmul.f32 1.6732632, %v2942_v59  ;;  %v830_v16 = vmul.f32 1.050701, %v803_v32  ;;  %v854_v58 = vld [vmem:[%s5361_s27 + $0x98] sm:$0xff] }
 0x266   :  { %v807_v57 = vsel %vm672_vm12, %v4230_v39, %v780_v55  ;;  %v3588_v6 = vpop.eup %3587  ;;  %v2939_v8 = vadd.f32 -1.0, %v3586_v5  ;;  %v774_v9 = vmul.f32 1.6732632, %v2941_v52  ;;  %v852_v55 = vld [vmem:[%s5361_s27 + $0x88] sm:$0xff]  ;;  %v853_v59 = vld [vmem:[%s5361_s27 + $0x90] sm:$0xff]  ;;  %v858_v47 = vld [vmem:[%s5361_s27 + $0xb8] sm:$0xff] }
 0x267   :  { %v834_v54 = vmul.f32 1.050701, %v807_v57  ;;  %v3590_v39 = vpop.eup %3589  ;;  %v802_v34 = vsel %vm667_vm0, %v4219_v46, %v775_v63  ;;  %v773_v13 = vmul.f32 1.6732632, %v2940_v56  ;;  %v2938_v19 = vadd.f32 -1.0, %v3588_v6  ;;  %v856_v57 = vld [vmem:[%s5361_s27 + $0xa8] sm:$0xff] }
 0x268   :  { %v2937_v17 = vadd.f32 -1.0, %v3590_v39  ;;  %v801_v42 = vsel %vm666_vm4, %v4227_v12, %v774_v9  ;;  %v772_v11 = vmul.f32 1.6732632, %v2939_v8  ;;  %v829_v18 = vmul.f32 1.050701, %v802_v34  ;;  %v857_v1 = vld [vmem:[%s5361_s27 + $0xb0] sm:$0xff] }
 0x269   :  { %949 = vmatpush2.msra.mxu1 %v834_v54  ;;  %v800_v46 = vsel %vm665_vm5, %v4240_v22, %v773_v13  ;;  %v771_v0 = vmul.f32 1.6732632, %v2938_v19  ;;  %v828_v21 = vmul.f32 1.050701, %v801_v42  ;;  %v860_v54 = vld [vmem:[%s5361_s27 + $0xc8] sm:$0xff]  ;;  %v859_v52 = vld [vmem:[%s5361_s27 + $0xc0] sm:$0xff] }
 0x26a   :  { %950 = vmatprep.subr.mxu1 %v5351_v14  ;;  %v799_v2 = vsel %vm664_vm7, %v4247_v20, %v772_v11  ;;  %v770_v7 = vmul.f32 1.6732632, %v2937_v17  ;;  %v827_v12 = vmul.f32 1.050701, %v800_v46  ;;  %v861_v4 = vld [vmem:[%s5361_s27 + $0xd0] sm:$0xff]  ;;  %v1042_v5 = vld [vmem:[%s5331_s4 + $0x8] sm:$0xff] }
 0x26b   :  { %951 = vmatpush2.msra.mxu1 %v833_v37  ;;  %v798_v23 = vsel %vm663_vm8, %v4254_v24, %v771_v0  ;;  %v826_v22 = vmul.f32 1.050701, %v799_v2  ;;  %v1047_v24 = vld [vmem:[%s5331_s4 + $0x30] sm:$0x3]  ;;  %v1041_v37 = vld [vmem:[%s5331_s4] sm:$0xff]  ;;  %vm1244_vm12 = vcmask 84992  }
 0x26c   :  { %952 = vmatprep.subr.mxu1 %v5351_v14  ;;  %v797_v28 = vsel %vm662_vm9, %v4260_v44, %v770_v7  ;;  %v825_v25 = vmul.f32 1.050701, %v798_v23  ;;  %v1046_v44 = vld [vmem:[%s5331_s4 + $0x28] sm:$0xff]  ;;  %vm1401_vm14 = vcmask 171008   ;;  %vm1500_vm15 = vcmask 162816   ;;  %s3637_s27 = smov 6  }
 0x26d   :  { %953 = vmatpush2.msra.mxu1 %v832_v50  ;;  %v824_v20 = vmul.f32 1.050701, %v797_v28  ;;  %vm2000_vm0 = vcmask 785408  }
 0x26e   :  { %954 = vmatprep.subr.mxu1 %v5351_v14 }
 0x26f   :  { %955 = vmatpush2.msra.mxu1 %v831_v60 }
 0x270   :  { %956 = vmatprep.subr.mxu1 %v5351_v14 }
 0x271   :  { %957 = vmatpush2.msra.mxu1 %v830_v16 }
 0x272   :  { %958 = vmatprep.subr.mxu1 %v5351_v14 }
 0x273   :  { %959 = vmatpush2.msra.mxu1 %v829_v18 }
 0x274   :  { %960 = vmatprep.subr.mxu1 %v5351_v14 }
 0x275   :  { %961 = vmatpush2.msra.mxu1 %v828_v21 }
 0x276   :  { %962 = vmatprep.subr.mxu1 %v5351_v14 }
 0x277   :  { %963 = vmatpush2.msra.mxu1 %v827_v12 }
 0x278   :  { %964 = vmatprep.subr.mxu1 %v5351_v14 }
 0x279   :  { %965 = vmatpush2.msra.mxu1 %v826_v22 }
 0x27a   :  { %966 = vmatprep.subr.mxu1 %v5351_v14 }
 0x27b   :  { %967 = vmatpush2.msra.mxu1 %v825_v25 }
 0x27c   :  { %968 = vmatprep.subr.mxu1 %v5351_v14 }
 0x27d   :  { %969 = vmatpush2.msra.mxu1 %v824_v20 }
 0x27e   :  { %971 = vmatmul.mubr.f32.vlgmr.msra.gmra.mxu1 %v835_v62  ;;  %3363 = vmatprep.subr.msk.mxu1 %vm1091_vm10, %v1047_v24 }
 0x27f   :  { %2949 = vmatprep.mubr.msk.f32.mxu1 %vm863_vm6, %v838_v27  ;;  %3364 = vmatpush3.msk.msra.mxu1 %vm1091_vm10, %v1047_v24 }
 0x280   :  { %3365 = vmatprep.subr.mxu1 %v1046_v44 }
 0x281   :  { %3366 = vmatpush3.msra.mxu1 %v1046_v44 }
 0x282   :  { %976 = vmatmul.mubr.f32.gmra.mxu1 %v837_v61  ;;  %3367 = vmatprep.subr.mxu1 %v1045_v51 }
 0x283   :  { %2950 = vmatprep.mubr.msk.f32.mxu1 %vm863_vm6, %v840_v29  ;;  %3368 = vmatpush3.msra.mxu1 %v1045_v51 }
 0x284   :  { %3369 = vmatprep.subr.mxu1 %v1044_v30 }
 0x285   :  { %3370 = vmatpush3.msra.mxu1 %v1044_v30 }
 0x286   :  { %981 = vmatmul.mubr.f32.gmra.mxu1 %v839_v48  ;;  %3371 = vmatprep.subr.mxu1 %v1043_v41 }
 0x287   :  { %2951 = vmatprep.mubr.msk.f32.mxu1 %vm863_vm6, %v842_v33  ;;  %3372 = vmatpush3.msra.mxu1 %v1043_v41 }
 0x288   :  { %3373 = vmatprep.subr.mxu1 %v1042_v5 }
 0x289   :  { %3374 = vmatpush3.msra.mxu1 %v1042_v5 }
 0x28a   :  { %986 = vmatmul.mubr.f32.gmra.mxu1 %v841_v31  ;;  %3375 = vmatprep.subr.mxu1 %v1041_v37 }
 0x28b   :  { %2952 = vmatprep.mubr.msk.f32.mxu1 %vm863_vm6, %v844_v35  ;;  %3376 = vmatpush3.msra.mxu1 %v1041_v37  ;;  %v1551_v37 = vld [vmem:[%s5334_s6] sm:$0xff] }
 0x28e   :  { %991 = vmatmul.mubr.f32.gmra.mxu1 %v843_v36  ;;  %v1516_v36 = vld [vmem:[%s5333_s5 + $0x8] sm:$0xff] }
 0x28f   :  { %2953 = vmatprep.mubr.msk.f32.mxu1 %vm863_vm6, %v846_v40  ;;  %1724 = vmatprep.mubr.f32.mxu0 %v1516_v36  ;;  %v1517_v40 = vld [vmem:[%s5333_s5 + $0x10] sm:$0xff] }
 0x292   :  { %996 = vmatmul.mubr.f32.gmra.mxu1 %v845_v38  ;;  %v1561_v38 = vld [vmem:[%s5334_s6 + $0x50] sm:$0xff] }
 0x293   :  { %2954 = vmatprep.mubr.msk.f32.mxu1 %vm863_vm6, %v848_v43  ;;  %v1562_v43 = vld [vmem:[%s5334_s6 + $0x58] sm:$0xff] }
 0x296   :  { %1001 = vmatmul.mubr.f32.gmra.mxu1 %v847_v45  ;;  %v1559_v45 = vld [vmem:[%s5334_s6 + $0x40] sm:$0xff] }
 0x297   :  { %2955 = vmatprep.mubr.msk.f32.mxu1 %vm863_vm6, %v850_v49  ;;  %v1560_v49 = vld [vmem:[%s5334_s6 + $0x48] sm:$0xff] }
 0x29a   :  { %1006 = vmatmul.mubr.f32.gmra.mxu1 %v849_v53 }
 0x29b   :  { %2956 = vmatprep.mubr.msk.f32.mxu1 %vm863_vm6, %v852_v55 }
 0x29e   :  { %1011 = vmatmul.mubr.f32.gmra.mxu1 %v851_v26  ;;  %v1557_v26 = vld [vmem:[%s5334_s6 + $0x30] sm:$0xff] }
 0x29f   :  { %2957 = vmatprep.mubr.msk.f32.mxu1 %vm863_vm6, %v854_v58  ;;  %v1558_v58 = vld [vmem:[%s5334_s6 + $0x38] sm:$0xff] }
 0x2a2   :  { %1016 = vmatmul.mubr.f32.gmra.mxu1 %v853_v59 }
 0x2a3   :  { %2958 = vmatprep.mubr.msk.f32.mxu1 %vm863_vm6, %v856_v57 }
 0x2a6   :  { %1021 = vmatmul.mubr.f32.gmra.mxu1 %v855_v10  ;;  %v1555_v10 = vld [vmem:[%s5334_s6 + $0x20] sm:$0xff] }
 0x2a7   :  { %2959 = vmatprep.mubr.msk.f32.mxu1 %vm863_vm6, %v858_v47  ;;  %v1556_v47 = vld [vmem:[%s5334_s6 + $0x28] sm:$0xff] }
 0x2aa   :  { %1026 = vmatmul.mubr.f32.gmra.mxu1 %v857_v1 }
 0x2ab   :  { %2960 = vmatprep.mubr.msk.f32.mxu1 %vm863_vm6, %v860_v54 }
 0x2ae   :  { %1031 = vmatmul.mubr.f32.gmra.mxu1 %v859_v52  ;;  %v1553_v52 = vld [vmem:[%s5334_s6 + $0x10] sm:$0xff] }
 0x2af   :  { %2961 = vmatprep.mubr.msk.f32.mxu1 %vm863_vm6, %v862_v3  ;;  %vm1230_vm6 = vcmask 89088   ;;  %v1554_v3 = vld [vmem:[%s5334_s6 + $0x18] sm:$0xff] }
 0x2b2   :  { %1036 = vmatmul.mubr.f32.gmra.mxu1 %v861_v4 }
 0x33e   :  { %v972_v56 = vpop.f32.mrf.mxu1 }
 0x33f   :  { %3377 = vmatprep.mubr.msk.f32.mxu1 %vm1048_vm11, %v972_v56 }
 0x340   :  { %v974_v15 = vpop.f32.mrf.mxu1 }
 0x342   :  { %v977_v63 = vpop.f32.mrf.mxu1 }
 0x343   :  { %3378 = vmatmul.mubr.msk.f32.vlgmr.msra.gmra.mxu1 %vm1048_vm11, %v977_v63  ;;  %v1552_v63 = vld [vmem:[%s5334_s6 + $0x8] sm:$0xff] }
 0x344   :  { %v979_v6 = vpop.f32.mrf.mxu1 }
 0x346   :  { %v982_v50 = vpop.f32.mrf.mxu1 }
 0x347   :  { %3380 = vmatprep.mubr.msk.f32.mxu1 %vm1048_vm11, %v982_v50 }
 0x348   :  { %v984_v8 = vpop.f32.mrf.mxu1 }
 0x34a   :  { %v987_v32 = vpop.f32.mrf.mxu1 }
 0x34b   :  { %3381 = vmatmul.mubr.msk.f32.gmra.mxu1 %vm1048_vm11, %v987_v32 }
 0x34c   :  { %v989_v9 = vpop.f32.mrf.mxu1 }
 0x34e   :  { %v992_v39 = vpop.f32.mrf.mxu1 }
 0x34f   :  { %3383 = vmatprep.mubr.msk.f32.mxu1 %vm1048_vm11, %v992_v39 }
 0x350   :  { %v994_v60 = vpop.f32.mrf.mxu1 }
 0x352   :  { %v997_v34 = vpop.f32.mrf.mxu1 }
 0x353   :  { %3384 = vmatmul.mubr.msk.f32.gmra.mxu1 %vm1048_vm11, %v997_v34 }
 0x354   :  { %v999_v13 = vpop.f32.mrf.mxu1 }
 0x356   :  { %v1002_v19 = vpop.f32.mrf.mxu1 }
 0x357   :  { %3386 = vmatprep.mubr.msk.f32.mxu1 %vm1048_vm11, %v1002_v19 }
 0x358   :  { %v1004_v16 = vpop.f32.mrf.mxu1 }
 0x35a   :  { %v1007_v17 = vpop.f32.mrf.mxu1 }
 0x35b   :  { %3387 = vmatmul.mubr.msk.f32.gmra.mxu1 %vm1048_vm11, %v1007_v17 }
 0x35c   :  { %v1009_v42 = vpop.f32.mrf.mxu1 }
 0x35e   :  { %v1012_v11 = vpop.f32.mrf.mxu1 }
 0x35f   :  { %3389 = vmatprep.mubr.msk.f32.mxu1 %vm1048_vm11, %v1012_v11 }
 0x360   :  { %v1014_v18 = vpop.f32.mrf.mxu1 }
 0x362   :  { %v1017_v46 = vpop.f32.mrf.mxu1 }
 0x363   :  { %3390 = vmatmul.mubr.msk.f32.gmra.mxu1 %vm1048_vm11, %v1017_v46 }
 0x364   :  { %v1019_v0 = vpop.f32.mrf.mxu1 }
 0x366   :  { %v1022_v21 = vpop.f32.mrf.mxu1 }
 0x367   :  { %3392 = vmatprep.mubr.msk.f32.mxu1 %vm1048_vm11, %v1022_v21 }
 0x368   :  { %v1024_v2 = vpop.f32.mrf.mxu1 }
 0x36a   :  { %v1027_v7 = vpop.f32.mrf.mxu1 }
 0x36b   :  { %3393 = vmatmul.mubr.msk.f32.gmra.mxu1 %vm1048_vm11, %v1027_v7 }
 0x36c   :  { %v1029_v12 = vpop.f32.mrf.mxu1 }
 0x36e   :  { %v1032_v23 = vpop.f32.mrf.mxu1 }
 0x36f   :  { %3395 = vmatprep.mubr.msk.f32.mxu1 %vm1048_vm11, %v1032_v23 }
 0x370   :  { %v1034_v22 = vpop.f32.mrf.mxu1 }
 0x372   :  { %v1037_v28 = vpop.f32.mrf.mxu1 }
 0x373   :  { %3396 = vmatmul.mubr.msk.f32.gmra.mxu1 %vm1048_vm11, %v1037_v28 }
 0x374   :  { %v1039_v25 = vpop.f32.mrf.mxu1  ;;  %3418 = vmatprep.mubr.msk.f32.mxu1 %vm1623_vm13, %v1517_v40 }
 0x403   :  { %v4431_v20 = vpop.f32.mrf.mxu1 }
 0x404   :  { %1232 = vst.msk [vmem:[%s5332_s16 + $0x8] sm:$0xff] %vm1230_vm6, %v4431_v20  ;;  %1361 = vrot.lane.b32.xlu0 %v4431_v20, %s3635_s25  ;;  %1319 = vrot.lane.b32.xlu1 %v4431_v20, %s3632_s20 }
 0x405   :  { %v4442_v62 = vpop.f32.mrf.mxu1 }
 0x406   :  { %1231 = vst.msk [vmem:[%s5332_s16] sm:$0xff] %vm1230_vm6, %v4442_v62 }
 0x408   :  { %1460 = vrot.lane.b32.xlu0 %v4431_v20, %s3636_s26  ;;  %1418 = vrot.lane.b32.xlu1 %v4431_v20, %s3629_s21 }
 0x40b   :  { %v4453_v24 = vpop.f32.mrf.mxu1 }
 0x40c   :  { %1359 = vrot.lane.b32.xlu0 %v4442_v62, %s3635_s25  ;;  %1317 = vrot.lane.b32.xlu1 %v4442_v62, %s3632_s20  ;;  %1234 = vst.msk [vmem:[%s5332_s16 + $0x18] sm:$0xff] %vm1230_vm6, %v4453_v24 }
 0x40d   :  { %v4464_v27 = vpop.f32.mrf.mxu1 }
 0x40e   :  { %1233 = vst.msk [vmem:[%s5332_s16 + $0x10] sm:$0xff] %vm1230_vm6, %v4464_v27 }
 0x410   :  { %1458 = vrot.lane.b32.xlu0 %v4442_v62, %s3636_s26  ;;  %1416 = vrot.lane.b32.xlu1 %v4442_v62, %s3629_s21 }
 0x413   :  { %v4475_v44 = vpop.f32.mrf.mxu1 }
 0x414   :  { %1464 = vrot.lane.b32.xlu0 %v4453_v24, %s3636_s26  ;;  %1422 = vrot.lane.b32.xlu1 %v4453_v24, %s3629_s21  ;;  %1236 = vst.msk [vmem:[%s5332_s16 + $0x28] sm:$0xff] %vm1230_vm6, %v4475_v44 }
 0x415   :  { %v4486_v61 = vpop.f32.mrf.mxu1 }
 0x416   :  { %1235 = vst.msk [vmem:[%s5332_s16 + $0x20] sm:$0xff] %vm1230_vm6, %v4486_v61 }
 0x418   :  { %1462 = vrot.lane.b32.xlu0 %v4464_v27, %s3636_s26  ;;  %1420 = vrot.lane.b32.xlu1 %v4464_v27, %s3629_s21 }
 0x41b   :  { %v4497_v51 = vpop.f32.mrf.mxu1 }
 0x41c   :  { %1369 = vrot.lane.b32.xlu0 %v4475_v44, %s3635_s25  ;;  %1327 = vrot.lane.b32.xlu1 %v4475_v44, %s3632_s20  ;;  %1238 = vst.msk [vmem:[%s5332_s16 + $0x38] sm:$0xff] %vm1230_vm6, %v4497_v51 }
 0x41d   :  { %v4508_v29 = vpop.f32.mrf.mxu1 }
 0x41e   :  { %1237 = vst.msk [vmem:[%s5332_s16 + $0x30] sm:$0xff] %vm1230_vm6, %v4508_v29 }
 0x420   :  { %1373 = vrot.lane.b32.xlu0 %v4497_v51, %s3635_s25  ;;  %1331 = vrot.lane.b32.xlu1 %v4497_v51, %s3632_s20 }
 0x423   :  { %v4519_v30 = vpop.f32.mrf.mxu1 }
 0x424   :  { %1371 = vrot.lane.b32.xlu0 %v4508_v29, %s3635_s25  ;;  %1329 = vrot.lane.b32.xlu1 %v4508_v29, %s3632_s20  ;;  %1240 = vst.msk [vmem:[%s5332_s16 + $0x48] sm:$0xff] %vm1230_vm6, %v4519_v30 }
 0x425   :  { %v4530_v48 = vpop.f32.mrf.mxu1 }
 0x426   :  { %1239 = vst.msk [vmem:[%s5332_s16 + $0x40] sm:$0xff] %vm1230_vm6, %v4530_v48 }
 0x428   :  { %1377 = vrot.lane.b32.xlu0 %v4519_v30, %s3635_s25  ;;  %1335 = vrot.lane.b32.xlu1 %v4519_v30, %s3632_s20 }
 0x42b   :  { %v4541_v41 = vpop.f32.mrf.mxu1 }
 0x42c   :  { %1375 = vrot.lane.b32.xlu0 %v4530_v48, %s3635_s25  ;;  %1333 = vrot.lane.b32.xlu1 %v4530_v48, %s3632_s20  ;;  %1242 = vst.msk [vmem:[%s5332_s16 + $0x58] sm:$0xff] %vm1230_vm6, %v4541_v41 }
 0x42d   :  { %v4552_v33 = vpop.f32.mrf.mxu1 }
 0x42e   :  { %1241 = vst.msk [vmem:[%s5332_s16 + $0x50] sm:$0xff] %vm1230_vm6, %v4552_v33 }
 0x430   :  { %1381 = vrot.lane.b32.xlu0 %v4541_v41, %s3635_s25  ;;  %1339 = vrot.lane.b32.xlu1 %v4541_v41, %s3632_s20 }
 0x433   :  { %v4563_v31 = vpop.f32.mrf.mxu1 }
 0x434   :  { %5362 = vst [vmem:[#allocation3_spill] sm:$0xff] %v4563_v31  ;;  %1379 = vrot.lane.b32.xlu0 %v4552_v33, %s3635_s25  ;;  %1337 = vrot.lane.b32.xlu1 %v4552_v33, %s3632_s20  ;;  %1245 = vst.msk [vmem:[%s5332_s16 + $0x68] sm:$0xf] %vm1244_vm12, %v4563_v31 }
 0x435   :  { %v4574_v35 = vpop.f32.mrf.mxu1 }
 0x436   :  { %1243 = vst.msk [vmem:[%s5332_s16 + $0x60] sm:$0xff] %vm1230_vm6, %v4574_v35 }
 0x438   :  { %1385 = vrot.lane.b32.xlu0 %v4563_v31, %s3635_s25  ;;  %1343 = vrot.lane.b32.xlu1 %v4563_v31, %s3632_s20 }
 0x43c   :  { %1383 = vrot.lane.b32.xlu0 %v4574_v35, %s3635_s25  ;;  %1341 = vrot.lane.b32.xlu1 %v4574_v35, %s3632_s20 }
 0x440   :  { %1367 = vrot.lane.b32.xlu0 %v4486_v61, %s3635_s25  ;;  %1325 = vrot.lane.b32.xlu1 %v4486_v61, %s3632_s20 }
 0x444   :  { %1365 = vrot.lane.b32.xlu0 %v4453_v24, %s3635_s25  ;;  %1323 = vrot.lane.b32.xlu1 %v4453_v24, %s3632_s20 }
 0x448   :  { %1363 = vrot.lane.b32.xlu0 %v4464_v27, %s3635_s25  ;;  %1321 = vrot.lane.b32.xlu1 %v4464_v27, %s3632_s20 }
 0x44c   :  { %1484 = vrot.lane.b32.xlu0 %v4563_v31, %s3636_s26  ;;  %1442 = vrot.lane.b32.xlu1 %v4563_v31, %s3629_s21 }
 0x450   :  { %1480 = vrot.lane.b32.xlu0 %v4541_v41, %s3636_s26  ;;  %1438 = vrot.lane.b32.xlu1 %v4541_v41, %s3629_s21 }
 0x454   :  { %1478 = vrot.lane.b32.xlu0 %v4552_v33, %s3636_s26  ;;  %1436 = vrot.lane.b32.xlu1 %v4552_v33, %s3629_s21 }
 0x458   :  { %1476 = vrot.lane.b32.xlu0 %v4519_v30, %s3636_s26  ;;  %1434 = vrot.lane.b32.xlu1 %v4519_v30, %s3629_s21 }
 0x45c   :  { %1474 = vrot.lane.b32.xlu0 %v4530_v48, %s3636_s26  ;;  %1432 = vrot.lane.b32.xlu1 %v4530_v48, %s3629_s21 }
 0x460   :  { %1482 = vrot.lane.b32.xlu0 %v4574_v35, %s3636_s26  ;;  %1440 = vrot.lane.b32.xlu1 %v4574_v35, %s3629_s21 }
 0x464   :  { %1472 = vrot.lane.b32.xlu0 %v4497_v51, %s3636_s26  ;;  %1430 = vrot.lane.b32.xlu1 %v4497_v51, %s3629_s21 }
 0x468   :  { %1470 = vrot.lane.b32.xlu0 %v4508_v29, %s3636_s26  ;;  %1428 = vrot.lane.b32.xlu1 %v4508_v29, %s3629_s21 }
 0x46c   :  { %1468 = vrot.lane.b32.xlu0 %v4475_v44, %s3636_s26  ;;  %1426 = vrot.lane.b32.xlu1 %v4475_v44, %s3629_s21 }
 0x470   :  { %1466 = vrot.lane.b32.xlu0 %v4486_v61, %s3636_s26  ;;  %1424 = vrot.lane.b32.xlu1 %v4486_v61, %s3629_s21 }
 0x474   :  { %1615 = vperm.xlu0 %3536, %v1561_v38   ;;  %1620 = vperm.xlu1 %3535, %v1562_v43  }
 0x476   :  { %v1362_v53 = vpop.permute.xlu0 %1361  ;;  %v1320_v55 = vpop.permute.xlu1 %1319 }
 0x477   :  { %v1403_v50 = vsel %vm1401_vm14, %v1320_v55, %v1362_v53 }
 0x478   :  { %1605 = vperm.xlu0 %3536, %v1559_v45   ;;  %1610 = vperm.xlu1 %3535, %v1560_v49  }
 0x47a   :  { %v1461_v59 = vpop.permute.xlu0 %1460  ;;  %v1419_v57 = vpop.permute.xlu1 %1418 }
 0x47b   :  { %v1502_v60 = vsel %vm1500_vm15, %v1419_v57, %v1461_v59 }
 0x47c   :  { %1595 = vperm.xlu0 %3536, %v1557_v26   ;;  %1600 = vperm.xlu1 %3535, %v1558_v58  }
 0x47e   :  { %v1360_v1 = vpop.permute.xlu0 %1359  ;;  %v1318_v54 = vpop.permute.xlu1 %1317 }
 0x47f   :  { %v1402_v39 = vsel %vm1401_vm14, %v1318_v54, %v1360_v1 }
 0x480   :  { %1585 = vperm.xlu0 %3536, %v1555_v10   ;;  %1590 = vperm.xlu1 %3535, %v1556_v47  }
 0x482   :  { %v1459_v4 = vpop.permute.xlu0 %1458  ;;  %v1417_v5 = vpop.permute.xlu1 %1416 }
 0x483   :  { %v1501_v19 = vsel %vm1500_vm15, %v1417_v5, %v1459_v4 }
 0x484   :  { %1575 = vperm.xlu0 %3536, %v1553_v52   ;;  %1580 = vperm.xlu1 %3535, %v1554_v3  }
 0x486   :  { %v1465_v56 = vpop.permute.xlu0 %1464  ;;  %v1423_v15 = vpop.permute.xlu1 %1422 }
 0x487   :  { %v1504_v6 = vsel %vm1500_vm15, %v1423_v15, %v1465_v56 }
 0x488   :  { %3120 = vmatprep.subr.mxu0 %v1504_v6  ;;  %1565 = vperm.xlu0 %3536, %v1551_v37   ;;  %v1515_v6 = vld [vmem:[%s5333_s5] sm:$0xff] }
 0x489   :  { %1570 = vperm.xlu1 %3535, %v1552_v63   ;;  %3121 = vmatpush3.msra.mxu0 %v1403_v50  ;;  %v1519_v50 = vld [vmem:[%s5333_s5 + $0x20] sm:$0xff] }
 0x48a   :  { %v1463_v8 = vpop.permute.xlu0 %1462  ;;  %v1421_v32 = vpop.permute.xlu1 %1420 }
 0x48b   :  { %v1503_v9 = vsel %vm1500_vm15, %v1421_v32, %v1463_v8 }
 0x48c   :  { %3122 = vmatprep.subr.mxu0 %v1503_v9  ;;  %v1518_v9 = vld [vmem:[%s5333_s5 + $0x18] sm:$0xff] }
 0x48d   :  { %3123 = vmatpush3.msra.mxu0 %v1402_v39  ;;  %v1522_v39 = vld [vmem:[%s5333_s5 + $0x38] sm:$0xff] }
 0x48e   :  { %3124 = vmatprep.subr.mxu0 %v1502_v60  ;;  %v1370_v34 = vpop.permute.xlu0 %1369  ;;  %v1328_v13 = vpop.permute.xlu1 %1327 }
 0x48f   :  { %3125 = vmatpush3.msra.mxu0 %v4563_v31  ;;  %v1407_v54 = vsel %vm1401_vm14, %v1328_v13, %v1370_v34  ;;  %v1521_v13 = vld [vmem:[%s5333_s5 + $0x30] sm:$0xff] }
 0x490   :  { %3126 = vmatprep.subr.mxu0 %v1501_v19  ;;  %v1525_v19 = vld [vmem:[%s5333_s5 + $0x50] sm:$0xff] }
 0x491   :  { %3127 = vmatpush3.msra.mxu0 %v4574_v35 }
 0x492   :  { %v1374_v16 = vpop.permute.xlu0 %1373  ;;  %v1332_v17 = vpop.permute.xlu1 %1331 }
 0x493   :  { %v1409_v57 = vsel %vm1401_vm14, %v1332_v17, %v1374_v16 }
 0x496   :  { %v1372_v42 = vpop.permute.xlu0 %1371  ;;  %v1330_v11 = vpop.permute.xlu1 %1329 }
 0x497   :  { %v1408_v1 = vsel %vm1401_vm14, %v1330_v11, %v1372_v42  ;;  %v1524_v42 = vld [vmem:[%s5333_s5 + $0x48] sm:$0xff] }
 0x498   :  { %v1528_v11 = vld [vmem:[%s5333_s5 + $0x68] sm:$0xff] }
 0x49a   :  { %v1378_v18 = vpop.permute.xlu0 %1377  ;;  %v1336_v46 = vpop.permute.xlu1 %1335 }
 0x49b   :  { %v1411_v55 = vsel %vm1401_vm14, %v1336_v46, %v1378_v18 }
 0x49e   :  { %v1376_v0 = vpop.permute.xlu0 %1375  ;;  %v1334_v21 = vpop.permute.xlu1 %1333 }
 0x49f   :  { %v1410_v59 = vsel %vm1401_vm14, %v1334_v21, %v1376_v0  ;;  %v1527_v21 = vld [vmem:[%s5333_s5 + $0x60] sm:$0xff] }
 0x4a2   :  { %v1382_v2 = vpop.permute.xlu0 %1381  ;;  %v1340_v7 = vpop.permute.xlu1 %1339 }
 0x4a3   :  { %v1413_v43 = vsel %vm1401_vm14, %v1340_v7, %v1382_v2  ;;  %v1531_v2 = vld [vmem:[%s5333_s5 + $0x80] sm:$0xff] }
 0x4a6   :  { %v1380_v12 = vpop.permute.xlu0 %1379  ;;  %v1338_v23 = vpop.permute.xlu1 %1337 }
 0x4a7   :  { %v1412_v53 = vsel %vm1401_vm14, %v1338_v23, %v1380_v12 }
 0x4aa   :  { %v1386_v22 = vpop.permute.xlu0 %1385  ;;  %v1344_v28 = vpop.permute.xlu1 %1343 }
 0x4ab   :  { %v1415_v25 = vsel %vm1401_vm14, %v1344_v28, %v1386_v22  ;;  %v1530_v28 = vld [vmem:[%s5333_s5 + $0x78] sm:$0xff] }
 0x4ac   :  { %3128 = vmatprep.subr.mxu0 %v1415_v25  ;;  %v1534_v25 = vld [vmem:[%s5333_s5 + $0x98] sm:$0xff] }
 0x4ad   :  { %3129 = vmatpush3.msra.mxu0 %v4541_v41 }
 0x4ae   :  { %v1384_v36 = vpop.permute.xlu0 %1383  ;;  %v1342_v40 = vpop.permute.xlu1 %1341 }
 0x4af   :  { %v1414_v38 = vsel %vm1401_vm14, %v1342_v40, %v1384_v36 }
 0x4b0   :  { %3130 = vmatprep.subr.mxu0 %v1414_v38 }
 0x4b1   :  { %3131 = vmatpush3.msra.mxu0 %v4552_v33 }
 0x4b2   :  { %v1368_v45 = vpop.permute.xlu0 %1367  ;;  %v1326_v49 = vpop.permute.xlu1 %1325  ;;  %3132 = vmatprep.subr.mxu0 %v1413_v43 }
 0x4b3   :  { %3133 = vmatpush3.msra.mxu0 %v4519_v30  ;;  %v1406_v4 = vsel %vm1401_vm14, %v1326_v49, %v1368_v45  ;;  %v1533_v45 = vld [vmem:[%s5333_s5 + $0x90] sm:$0xff] }
 0x4b4   :  { %3134 = vmatprep.subr.mxu0 %v1412_v53  ;;  %v1537_v49 = vld [vmem:[%s5333_s5 + $0xb0] sm:$0xff] }
 0x4b5   :  { %3135 = vmatpush3.msra.mxu0 %v4530_v48 }
 0x4b6   :  { %v1366_v26 = vpop.permute.xlu0 %1365  ;;  %v1324_v58 = vpop.permute.xlu1 %1323  ;;  %3136 = vmatprep.subr.mxu0 %v1411_v55 }
 0x4b7   :  { %3137 = vmatpush3.msra.mxu0 %v4497_v51  ;;  %v1405_v37 = vsel %vm1401_vm14, %v1324_v58, %v1366_v26 }
 0x4b8   :  { %3138 = vmatprep.subr.mxu0 %v1410_v59  ;;  %v1536_v59 = vld [vmem:[%s5333_s5 + $0xa8] sm:$0xff] }
 0x4b9   :  { %3139 = vmatpush3.msra.mxu0 %v4508_v29 }
 0x4ba   :  { %v1364_v10 = vpop.permute.xlu0 %1363  ;;  %v1322_v47 = vpop.permute.xlu1 %1321  ;;  %3140 = vmatprep.subr.mxu0 %v1409_v57  ;;  %v1540_v57 = vld [vmem:[%s5333_s5 + $0xc8] sm:$0xff] }
 0x4bb   :  { %3141 = vmatpush3.msra.mxu0 %v4475_v44  ;;  %v1404_v63 = vsel %vm1401_vm14, %v1322_v47, %v1364_v10 }
 0x4bc   :  { %3142 = vmatprep.subr.mxu0 %v1408_v1 }
 0x4bd   :  { %3143 = vmatpush3.msra.mxu0 %v4486_v61 }
 0x4be   :  { %v1485_v52 = vpop.permute.xlu0 %1484  ;;  %v1443_v3 = vpop.permute.xlu1 %1442  ;;  %3144 = vmatprep.subr.mxu0 %v1407_v54 }
 0x4bf   :  { %3145 = vmatpush3.msra.mxu0 %v4453_v24  ;;  %v1514_v5 = vsel %vm1500_vm15, %v1443_v3, %v1485_v52  ;;  %v1539_v52 = vld [vmem:[%s5333_s5 + $0xc0] sm:$0xff]  ;;  %v1520_v3 = vld [vmem:[%s5333_s5 + $0x28] sm:$0xff] }
 0x4c0   :  { %3146 = vmatprep.subr.mxu0 %v1406_v4  ;;  %3398 = vmatprep.subr.mxu1 %v1514_v5  ;;  %v1543_v4 = vld [vmem:[%s5333_s5 + $0xe0] sm:$0xff] }
 0x4c1   :  { %3147 = vmatpush3.msra.mxu0 %v4464_v27  ;;  %3399 = vmatpush3.msra.mxu1 %v1514_v5  ;;  %v1523_v5 = vld [vmem:[%s5333_s5 + $0x40] sm:$0xff] }
 0x4c2   :  { %v1481_v56 = vpop.permute.xlu0 %1480  ;;  %v1439_v15 = vpop.permute.xlu1 %1438  ;;  %3148 = vmatprep.subr.mxu0 %v1405_v37  ;;  %v1542_v37 = vld [vmem:[%s5333_s5 + $0xd8] sm:$0xff] }
 0x4c3   :  { %3149 = vmatpush3.msra.mxu0 %v4431_v20  ;;  %v1512_v7 = vsel %vm1500_vm15, %v1439_v15, %v1481_v56  ;;  %v1526_v56 = vld [vmem:[%s5333_s5 + $0x58] sm:$0xff] }
 0x4c4   :  { %3150 = vmatprep.subr.mxu0 %v1404_v63  ;;  %v1546_v15 = vld [vmem:[%s5333_s5 + $0xf8] sm:$0xff]  ;;  %v1529_v63 = vld [vmem:[%s5333_s5 + $0x70] sm:$0xff] }
 0x4c5   :  { %3151 = vmatpush3.msra.mxu0 %v4442_v62 }
 0x4c6   :  { %v1479_v8 = vpop.permute.xlu0 %1478  ;;  %v1437_v32 = vpop.permute.xlu1 %1436  ;;  %1725 = vmatmul.mubr.f32.vlgmr.msra.gmra.mxu0 %v1515_v6  ;;  %2425 = vmatprep.subr.mxu0 %v5351_v14  ;;  %v1545_v6 = vld [vmem:[%s5333_s5 + $0xf0] sm:$0xff] }
 0x4c7   :  { %1729 = vmatprep.mubr.f32.mxu0 %v1519_v50  ;;  %v1511_v22 = vsel %vm1500_vm15, %v1437_v32, %v1479_v8  ;;  %v1532_v50 = vld [vmem:[%s5333_s5 + $0x88] sm:$0xff]  ;;  %v1549_v8 = vld [vmem:[%s5333_s5 + $0x110] sm:$0xff]  ;;  %v1535_v32 = vld [vmem:[%s5333_s5 + $0xa0] sm:$0xff] }
 0x4ca   :  { %v1477_v60 = vpop.permute.xlu0 %1476  ;;  %v1435_v34 = vpop.permute.xlu1 %1434  ;;  %1730 = vmatmul.mubr.f32.gmra.mxu0 %v1518_v9  ;;  %v1548_v9 = vld [vmem:[%s5333_s5 + $0x108] sm:$0xff] }
 0x4cb   :  { %1734 = vmatprep.mubr.f32.mxu0 %v1522_v39  ;;  %v1510_v36 = vsel %vm1500_vm15, %v1435_v34, %v1477_v60  ;;  %v1538_v39 = vld [vmem:[%s5333_s5 + $0xb8] sm:$0xff]  ;;  %v1541_v60 = vld [vmem:[%s5333_s5 + $0xd0] sm:$0xff]  ;;  %v1544_v34 = vld [vmem:[%s5333_s5 + $0xe8] sm:$0xff] }
 0x4ce   :  { %v1475_v16 = vpop.permute.xlu0 %1474  ;;  %v1433_v17 = vpop.permute.xlu1 %1432  ;;  %1735 = vmatmul.mubr.f32.gmra.mxu0 %v1521_v13  ;;  %v1547_v13 = vld [vmem:[%s5333_s5 + $0x100] sm:$0xff] }
 0x4cf   :  { %1739 = vmatprep.mubr.f32.mxu0 %v1525_v19  ;;  %v1509_v43 = vsel %vm1500_vm15, %v1433_v17, %v1475_v16  ;;  %v1550_v19 = vld [vmem:[%s5333_s5 + $0x118] sm:$0xff]  ;;  %v1994_v16 = vld [vmem:[%s5335_s7] sm:$0xff] }
 0x4d2   :  { %v1483_v18 = vpop.permute.xlu0 %1482  ;;  %v1441_v46 = vpop.permute.xlu1 %1440  ;;  %1740 = vmatmul.mubr.f32.gmra.mxu0 %v1524_v42 }
 0x4d3   :  { %v1513_v0 = vsel %vm1500_vm15, %v1441_v46, %v1483_v18  ;;  %1744 = vmatprep.mubr.f32.mxu0 %v1528_v11 }
 0x4d4   :  { %3400 = vmatprep.subr.mxu1 %v1513_v0 }
 0x4d5   :  { %3401 = vmatpush3.msra.mxu1 %v1513_v0 }
 0x4d6   :  { %v1473_v12 = vpop.permute.xlu0 %1472  ;;  %3402 = vmatprep.subr.mxu1 %v1512_v7  ;;  %v1431_v23 = vpop.permute.xlu1 %1430  ;;  %1745 = vmatmul.mubr.f32.gmra.mxu0 %v1527_v21 }
 0x4d7   :  { %3403 = vmatpush3.msra.mxu1 %v1512_v7  ;;  %1749 = vmatprep.mubr.f32.mxu0 %v1531_v2  ;;  %v1508_v53 = vsel %vm1500_vm15, %v1431_v23, %v1473_v12 }
 0x4d8   :  { %3404 = vmatprep.subr.mxu1 %v1511_v22 }
 0x4d9   :  { %3405 = vmatpush3.msra.mxu1 %v1511_v22 }
 0x4da   :  { %v1471_v40 = vpop.permute.xlu0 %1470  ;;  %3406 = vmatprep.subr.mxu1 %v1510_v36  ;;  %v1429_v38 = vpop.permute.xlu1 %1428  ;;  %1750 = vmatmul.mubr.f32.gmra.mxu0 %v1530_v28 }
 0x4db   :  { %3407 = vmatpush3.msra.mxu1 %v1510_v36  ;;  %1754 = vmatprep.mubr.f32.mxu0 %v1534_v25  ;;  %v1507_v58 = vsel %vm1500_vm15, %v1429_v38, %v1471_v40 }
 0x4dc   :  { %3408 = vmatprep.subr.mxu1 %v1509_v43 }
 0x4dd   :  { %3409 = vmatpush3.msra.mxu1 %v1509_v43 }
 0x4de   :  { %v1469_v55 = vpop.permute.xlu0 %1468  ;;  %3410 = vmatprep.subr.mxu1 %v1508_v53  ;;  %v1427_v26 = vpop.permute.xlu1 %1426  ;;  %1755 = vmatmul.mubr.f32.gmra.mxu0 %v1533_v45 }
 0x4df   :  { %3411 = vmatpush3.msra.mxu1 %v1508_v53  ;;  %1759 = vmatprep.mubr.f32.mxu0 %v1537_v49  ;;  %v1506_v10 = vsel %vm1500_vm15, %v1427_v26, %v1469_v55 }
 0x4e0   :  { %3412 = vmatprep.subr.mxu1 %v1507_v58 }
 0x4e1   :  { %3413 = vmatpush3.msra.mxu1 %v1507_v58 }
 0x4e2   :  { %v1467_v47 = vpop.permute.xlu0 %1466  ;;  %3414 = vmatprep.subr.mxu1 %v1506_v10  ;;  %v1425_v1 = vpop.permute.xlu1 %1424  ;;  %1760 = vmatmul.mubr.f32.gmra.mxu0 %v1536_v59 }
 0x4e3   :  { %3415 = vmatpush3.msra.mxu1 %v1506_v10  ;;  %v1505_v54 = vsel %vm1500_vm15, %v1425_v1, %v1467_v47  ;;  %1764 = vmatprep.mubr.f32.mxu0 %v1540_v57 }
 0x4e4   :  { %3416 = vmatprep.subr.mxu1 %v1505_v54 }
 0x4e5   :  { %3417 = vmatpush3.msra.mxu1 %v1505_v54 }
 0x4e6   :  { %1765 = vmatmul.mubr.f32.gmra.mxu0 %v1539_v52  ;;  %3419 = vmatmul.mubr.msk.f32.vlgmr.msra.gmra.mxu1 %vm1623_vm13, %v1520_v3 }
 0x4e7   :  { %1769 = vmatprep.mubr.f32.mxu0 %v1543_v4  ;;  %3421 = vmatprep.mubr.msk.f32.mxu1 %vm1623_vm13, %v1523_v5 }
 0x4ea   :  { %1770 = vmatmul.mubr.f32.gmra.mxu0 %v1542_v37  ;;  %3422 = vmatmul.mubr.msk.f32.gmra.mxu1 %vm1623_vm13, %v1526_v56 }
 0x4eb   :  { %1774 = vmatprep.mubr.f32.mxu0 %v1546_v15  ;;  %3424 = vmatprep.mubr.msk.f32.mxu1 %vm1623_vm13, %v1529_v63 }
 0x4ee   :  { %1775 = vmatmul.mubr.f32.gmra.mxu0 %v1545_v6  ;;  %3425 = vmatmul.mubr.msk.f32.gmra.mxu1 %vm1623_vm13, %v1532_v50 }
 0x4ef   :  { %1779 = vmatprep.mubr.f32.mxu0 %v1549_v8  ;;  %3427 = vmatprep.mubr.msk.f32.mxu1 %vm1623_vm13, %v1535_v32  ;;  %v1621_v38 = vpop.permute.xlu1 %1620  ;;  %v1616_v45 = vpop.permute.xlu0 %1615 }
 0x4f2   :  { %1780 = vmatmul.mubr.f32.gmra.mxu0 %v1548_v9  ;;  %3428 = vmatmul.mubr.msk.f32.gmra.mxu1 %vm1623_vm13, %v1538_v39 }
 0x4f3   :  { %3430 = vmatprep.mubr.msk.f32.mxu1 %vm1623_vm13, %v1541_v60  ;;  %v1611_v58 = vpop.permute.xlu1 %1610  ;;  %v1606_v10 = vpop.permute.xlu0 %1605 }
 0x4f6   :  { %3431 = vmatmul.mubr.msk.f32.gmra.mxu1 %vm1623_vm13, %v1544_v34 }
 0x4f7   :  { %3433 = vmatprep.mubr.msk.f32.mxu1 %vm1623_vm13, %v1547_v13  ;;  %v1601_v3 = vpop.permute.xlu1 %1600  ;;  %v1596_v37 = vpop.permute.xlu0 %1595 }
 0x4fa   :  { %3434 = vmatmul.mubr.msk.f32.gmra.mxu1 %vm1623_vm13, %v1550_v19 }
 0x4fb   :  { %3460 = vmatprep.mubr.msk.f32.mxu1 %vm2000_vm0, %v1994_v16  ;;  %v1591_v39 = vpop.permute.xlu1 %1590 }
 0x586   :  { %v3152_v17 = vpop.f32.mrf.mxu0 }
 0x588   :  { %v3153_v42 = vpop.f32.mrf.mxu0 }
 0x589   :  { %v4844_v11 = vadd.f32 %v3153_v42, %v3152_v17  ;;  %v1586_v17 = vpop.permute.xlu0 %1585 }
 0x58a   :  { %v4846_v18 = vpop.f32.mrf.mxu0 }
 0x58c   :  { %v4848_v46 = vpop.f32.mrf.mxu0 }
 0x58e   :  { %v3158_v0 = vpop.f32.mrf.mxu0 }
 0x590   :  { %v3159_v21 = vpop.f32.mrf.mxu0 }
 0x592   :  { %v3161_v2 = vpop.f32.mrf.mxu0 }
 0x594   :  { %v3162_v7 = vpop.f32.mrf.mxu0 }
 0x596   :  { %v3164_v12 = vpop.f32.mrf.mxu0 }
 0x598   :  { %v3165_v23 = vpop.f32.mrf.mxu0 }
 0x59a   :  { %v3167_v22 = vpop.f32.mrf.mxu0 }
 0x59c   :  { %v3168_v28 = vpop.f32.mrf.mxu0 }
 0x59d   :  { %v3169_v13 = vadd.f32 %v3168_v28, %v3167_v22 }
 0x59e   :  { %v3170_v25 = vpop.f32.mrf.mxu0 }
 0x5a0   :  { %v3171_v36 = vpop.f32.mrf.mxu0 }
 0x5a1   :  { %v3172_v8 = vadd.f32 %v3171_v36, %v3170_v25 }
 0x5a2   :  { %v3173_v40 = vpop.f32.mrf.mxu0 }
 0x5a4   :  { %v3174_v43 = vpop.f32.mrf.mxu0 }
 0x5a5   :  { %v3175_v56 = vadd.f32 %v3174_v43, %v3173_v40  ;;  %v3166_v43 = vadd.f32 %v3165_v23, %v3164_v12 }
 0x5a6   :  { %v3176_v49 = vpop.f32.mrf.mxu0  ;;  %v4850_v53 = vpop.f32.mrf.mxu1 }
 0x5a7   :  { %v1762_v60 = vadd.f32 %v3175_v56, %v1601_v3  ;;  %v1581_v3 = vpop.permute.xlu1 %1580  ;;  %v1747_v23 = vadd.f32 %v3166_v43, %v1586_v17 }
 0x5a8   :  { %v3177_v55 = vpop.f32.mrf.mxu0  ;;  %v4852_v26 = vpop.f32.mrf.mxu1 }
 0x5a9   :  { %v3178_v50 = vadd.f32 %v3177_v55, %v3176_v49  ;;  %v3163_v49 = vadd.f32 %v3162_v7, %v3161_v2  ;;  %v1752_v55 = vadd.f32 %v3169_v13, %v1591_v39 }
 0x5aa   :  { %v3179_v59 = vpop.f32.mrf.mxu0  ;;  %v3423_v57 = vpop.f32.mrf.mxu1 }
 0x5ab   :  { %v1767_v40 = vadd.f32 %v3178_v50, %v1606_v10 }
 0x5ac   :  { %v3180_v47 = vpop.f32.mrf.mxu0  ;;  %v4854_v1 = vpop.f32.mrf.mxu1 }
 0x5ad   :  { %v3181_v15 = vadd.f32 %v3180_v47, %v3179_v59  ;;  %v1757_v59 = vadd.f32 %v3172_v8, %v1596_v37  ;;  %v1576_v37 = vpop.permute.xlu0 %1575 }
 0x5ae   :  { %v3182_v54 = vpop.f32.mrf.mxu0  ;;  %v3426_v52 = vpop.f32.mrf.mxu1 }
 0x5af   :  { %v1772_v34 = vadd.f32 %v3181_v15, %v1611_v58  ;;  %v4867_v12 = vadd.f32 %v3426_v52, %v1752_v55  ;;  %v3157_v15 = vadd.f32 %v4848_v46, %v4846_v18 }
 0x5b0   :  { %v3183_v4 = vpop.f32.mrf.mxu0  ;;  %v1871_v5 = vpop.f32.mrf.mxu1 }
 0x5b1   :  { %v3184_v42 = vadd.f32 %v3183_v4, %v3182_v54  ;;  %v3160_v54 = vadd.f32 %v3159_v21, %v3158_v0  ;;  %v1932_v8 = vmul.f32 1.442695, %v4867_v12  ;;  %vm1915_vm13 = vcmp.gt.f32.partialorder %v4867_v12, 0.0 }
 0x5b2   :  { %v3185_v63 = vpop.f32.mrf.mxu0  ;;  %v3429_v6 = vpop.f32.mrf.mxu1 }
 0x5b3   :  { %v4856_v14 = vadd.f32 %v3429_v6, %v1762_v60  ;;  %v1777_v10 = vadd.f32 %v3184_v42, %v1616_v45  ;;  %v4871_v6 = vadd.f32 %v1871_v5, %v1747_v23  ;;  %v1737_v50 = vadd.f32 %v3160_v54, %v1576_v37  ;;  %v1566_v5 = vpop.permute.xlu0 %1565 }
 0x5b4   :  { %v3186_v32 = vpop.f32.mrf.mxu0  ;;  %v1881_v9 = vpop.f32.mrf.mxu1 }
 0x5b5   :  { %v3187_v19 = vadd.f32 %v3186_v32, %v3185_v63  ;;  %v4863_v58 = vadd.f32 %v1881_v9, %v1757_v59  ;;  %v1936_v4 = vmul.f32 1.442695, %v4856_v14  ;;  %v1742_v63 = vadd.f32 %v3163_v49, %v1581_v3  ;;  %v1571_v32 = vpop.permute.xlu1 %1570 }
 0x5b6   :  { %v3432_v16 = vpop.f32.mrf.mxu1  ;;  %v1732_v9 = vadd.f32 %v3157_v15, %v1571_v32  ;;  %v4878_v18 = vadd.f32 %v4854_v1, %v1737_v50  ;;  %v1930_v46 = vmul.f32 1.442695, %v4871_v6  ;;  %vm1917_vm9 = vcmp.gt.f32.partialorder %v4856_v14, 0.0 }
 0x5b7   :  { %v4858_v31 = vadd.f32 %v3432_v16, %v1772_v34  ;;  %v1782_v22 = vadd.f32 %v3187_v19, %v1621_v38  ;;  %v1934_v0 = vmul.f32 1.442695, %v4863_v58  ;;  %v4874_v52 = vadd.f32 %v3423_v57, %v1742_v63 }
 0x5b8   :  { %v1891_v47 = vpop.f32.mrf.mxu1  ;;  %v4882_v39 = vadd.f32 %v4850_v53, %v1732_v9  ;;  %v1727_v57 = vadd.f32 %v4844_v11, %v1566_v5  ;;  %v1926_v13 = vmul.f32 1.442695, %v4878_v18  ;;  %vm1916_vm11 = vcmp.gt.f32.partialorder %v4863_v58, 0.0 }
 0x5b9   :  { %v1940_v25 = vmul.f32 1.442695, %v4858_v31  ;;  %v4861_v36 = vadd.f32 %v1891_v47, %v1767_v40  ;;  %v1928_v60 = vmul.f32 1.442695, %v4874_v52  ;;  %vm1919_vm7 = vcmp.gt.f32.partialorder %v4858_v31, 0.0 }
 0x5ba   :  { %v3435_v28 = vpop.f32.mrf.mxu1  ;;  %v4887_v34 = vadd.f32 %v4852_v26, %v1727_v57  ;;  %v1924_v1 = vmul.f32 1.442695, %v4882_v39  ;;  %vm1914_vm14 = vcmp.gt.f32.partialorder %v4871_v6, 0.0  ;;  %vm1913_vm15 = vcmp.gt.f32.partialorder %v4874_v52, 0.0 }
 0x5bb   :  { %v1938_v56 = vmul.f32 1.442695, %v4861_v36  ;;  %3591 = vpow2.f32 %v1940_v25  ;;  %v1907_v2 = vadd.f32 %v3435_v28, %v1782_v22  ;;  %vm1918_vm8 = vcmp.gt.f32.partialorder %v4861_v36, 0.0 }
 0x5bc   :  { %v1901_v7 = vpop.f32.mrf.mxu1  ;;  %v1922_v16 = vmul.f32 1.442695, %v4887_v34 }
 0x5bd   :  { %v1902_v38 = vadd.f32 %v1901_v7, %v1777_v10  ;;  %3593 = vpow2.f32 %v1938_v56  ;;  %v1944_v21 = vmul.f32 1.442695, %v1907_v2  ;;  %vm1921_vm4 = vcmp.gt.f32.partialorder %v1907_v2, 0.0 }
 0x5be   :  { %3595 = vpow2.f32 %v1936_v4 }
 0x5bf   :  { %v1942_v45 = vmul.f32 1.442695, %v1902_v38  ;;  %3597 = vpow2.f32 %v1944_v21  ;;  %vm1920_vm5 = vcmp.gt.f32.partialorder %v1902_v38, 0.0 }
 0x5c1   :  { %3599 = vpow2.f32 %v1942_v45 }
 0x5c2   :  { %3601 = vpow2.f32 %v1934_v0 }
 0x5c3   :  { %3603 = vpow2.f32 %v1932_v8 }
 0x5c4   :  { %3605 = vpow2.f32 %v1930_v46 }
 0x5c5   :  { %3607 = vpow2.f32 %v1928_v60 }
 0x5c6   :  { %3609 = vpow2.f32 %v1926_v13 }
 0x5c7   :  { %3611 = vpow2.f32 %v1924_v1 }
 0x5c8   :  { %v3592_v19 = vpop.eup %3591  ;;  %3613 = vpow2.f32 %v1922_v16 }
 0x5c9   :  { %v3012_v11 = vadd.f32 -1.0, %v3592_v19 }
 0x5ca   :  { %v3594_v53 = vpop.eup %3593 }
 0x5cb   :  { %v3596_v17 = vpop.eup %3595  ;;  %v3011_v43 = vadd.f32 -1.0, %v3594_v53  ;;  %v1967_v55 = vmul.f32 1.6732632, %v3012_v11 }
 0x5cc   :  { %v3598_v42 = vpop.eup %3597  ;;  %v3010_v49 = vadd.f32 -1.0, %v3596_v17 }
 0x5cd   :  { %v3014_v26 = vadd.f32 -1.0, %v3598_v42  ;;  %v1966_v4 = vmul.f32 1.6732632, %v3011_v43  ;;  %v1979_v15 = vsel %vm1919_vm7, %v4858_v31, %v1967_v55  ;;  %vm1910_vm7 = vcmp.gt.f32.partialorder %v4887_v34, 0.0  ;;  %v1996_v55 = vld [vmem:[%s5335_s7 + $0x10] sm:$0xff] }
 0x5ce   :  { %v3600_v40 = vpop.eup %3599  ;;  %v1965_v63 = vmul.f32 1.6732632, %v3010_v49  ;;  %v1991_v8 = vmul.f32 1.050701, %v1979_v15 }
 0x5cf   :  { %v3602_v59 = vpop.eup %3601  ;;  %v3013_v47 = vadd.f32 -1.0, %v3600_v40  ;;  %v1969_v25 = vmul.f32 1.6732632, %v3014_v26  ;;  %v1978_v45 = vsel %vm1918_vm8, %v4861_v36, %v1966_v4  ;;  %v5363_v4 = vmov 0.0  }
 0x5d0   :  { %v3604_v22 = vpop.eup %3603  ;;  %v3009_v3 = vadd.f32 -1.0, %v3602_v59  ;;  %v1977_v32 = vsel %vm1917_vm9, %v4856_v14, %v1965_v63  ;;  %v1990_v46 = vmul.f32 1.050701, %v1978_v45  ;;  %v25_v63 = vstv %s5337_s15 }
 0x5d1   :  { %v1968_v28 = vmul.f32 1.6732632, %v3013_v47  ;;  %v1981_v54 = vsel %vm1921_vm4, %v1907_v2, %v1969_v25  ;;  %v3606_v56 = vpop.eup %3605  ;;  %v3008_v7 = vadd.f32 -1.0, %v3604_v22  ;;  %v1989_v13 = vmul.f32 1.050701, %v1977_v32  ;;  %v1995_v25 = vld [vmem:[%s5335_s7 + $0x8] sm:$0xff] }
 0x5d2   :  { %v1993_v10 = vmul.f32 1.050701, %v1981_v54  ;;  %v3608_v0 = vpop.eup %3607  ;;  %v3007_v21 = vadd.f32 -1.0, %v3606_v56  ;;  %v1964_v2 = vmul.f32 1.6732632, %v3009_v3  ;;  %vm1912_vm4 = vcmp.gt.f32.partialorder %v4878_v18, 0.0 }
 0x5d3   :  { %v1980_v23 = vsel %vm1920_vm5, %v1902_v38, %v1968_v28  ;;  %v3610_v50 = vpop.eup %3609  ;;  %v3006_v38 = vadd.f32 -1.0, %v3608_v0  ;;  %v1963_v31 = vmul.f32 1.6732632, %v3008_v7  ;;  %vm1911_vm5 = vcmp.gt.f32.partialorder %v4882_v39, 0.0  ;;  %v1998_v22 = vld [vmem:[%s5335_s7 + $0x20] sm:$0xff]  ;;  %v1999_v28 = vld [vmem:[%s5335_s7 + $0x28] sm:$0xff] }
 0x5d4   :  { %v1992_v37 = vmul.f32 1.050701, %v1980_v23  ;;  %3436 = vmatprep.subr.mxu1 %v1993_v10  ;;  %v3612_v9 = vpop.eup %3611  ;;  %v3005_v5 = vadd.f32 -1.0, %v3610_v50  ;;  %v1976_v36 = vsel %vm1916_vm11, %v4863_v58, %v1964_v2  ;;  %v1962_v57 = vmul.f32 1.6732632, %v3007_v21  ;;  %v2115_v3 = vld [vmem:[%s5336_s8 + $0x8] sm:$0xff] }
 0x5d5   :  { %3437 = vmatpush3.msra.mxu1 %v1993_v10  ;;  %v3614_v60 = vpop.eup %3613  ;;  %v3004_v1 = vadd.f32 -1.0, %v3612_v9  ;;  %v1975_v14 = vsel %vm1915_vm13, %v4867_v12, %v1963_v31  ;;  %v1961_v19 = vmul.f32 1.6732632, %v3006_v38  ;;  %v1988_v16 = vmul.f32 1.050701, %v1976_v36  ;;  %v2114_v54 = vld [vmem:[%s5336_s8] sm:$0xff] }
 0x5d6   :  { %3438 = vmatprep.subr.mxu1 %v1992_v37  ;;  %v3003_v53 = vadd.f32 -1.0, %v3614_v60  ;;  %v1974_v17 = vsel %vm1914_vm14, %v4871_v6, %v1962_v57  ;;  %v1960_v58 = vmul.f32 1.6732632, %v3005_v5  ;;  %v1987_v11 = vmul.f32 1.050701, %v1975_v14  ;;  %v2359_v38 = vld [vmem:[%s5339_s9 + $0x8] sm:$0xff] }
 0x5d7   :  { %3439 = vmatpush3.msra.mxu1 %v1992_v37  ;;  %v1973_v42 = vsel %vm1913_vm15, %v4874_v52, %v1961_v19  ;;  %v1959_v40 = vmul.f32 1.6732632, %v3004_v1  ;;  %v1986_v12 = vmul.f32 1.050701, %v1974_v17  ;;  %26 = vst [vmem:[#allocation2] sm:$0x1] %v25_v63 }
 0x5d8   :  { %3440 = vmatprep.subr.mxu1 %v1991_v8  ;;  %v1972_v43 = vsel %vm1912_vm4, %v4878_v18, %v1960_v58  ;;  %v1958_v26 = vmul.f32 1.6732632, %v3003_v53  ;;  %v1985_v6 = vmul.f32 1.050701, %v1973_v42  ;;  %vm2406_vm8 = vcmask 130048   ;;  %v2374_v32 = vld [vmem:[%s5340_s10 + $0x20] sm:$0xff] }
 0x5d9   :  { %3441 = vmatpush3.msra.mxu1 %v1991_v8  ;;  %v1971_v59 = vsel %vm1911_vm5, %v4882_v39, %v1959_v40  ;;  %v1984_v52 = vmul.f32 1.050701, %v1972_v43  ;;  %v2116_v39 = vld [vmem:[%s5336_s8 + $0x10] sm:$0x3f]  ;;  %3034 = vmatprep.mubr.msk.f32.mxu0 %vm2406_vm8, %v2359_v38  ;;  %v2375_v31 = vld [vmem:[%s5340_s10 + $0x28] sm:$0xff]  ;;  %v2370_v5 = vld [vmem:[%s5340_s10] sm:$0xff] }
 0x5da   :  { %3442 = vmatprep.subr.mxu1 %v1990_v46  ;;  %v1970_v47 = vsel %vm1910_vm7, %v4887_v34, %v1958_v26  ;;  %v1983_v49 = vmul.f32 1.050701, %v1971_v59  ;;  %v1997_v34 = vld [vmem:[%s5335_s7 + $0x18] sm:$0xff]  ;;  %v2372_v9 = vld [vmem:[%s5340_s10 + $0x10] sm:$0xff]  ;;  %v2371_v36 = vld [vmem:[%s5340_s10 + $0x8] sm:$0xff]  ;;  %vm2351_vm9 = vcmask 48128  }
 0x5db   :  { %3443 = vmatpush3.msra.mxu1 %v1990_v46  ;;  %v1982_v18 = vmul.f32 1.050701, %v1970_v47  ;;  %v2373_v46 = vld [vmem:[%s5340_s10 + $0x18] sm:$0xff]  ;;  %s3640_s10 = smov 124   ;;  %vm2308_vm11 = vcmask 56320   ;;  %v2368_v38 = vld [vmem:[%s5339_s9 + $0x50] sm:$0xff] }
 0x5dc   :  { %3444 = vmatprep.subr.mxu1 %v1989_v13  ;;  %vm2655_vm5 = vcmask 64512  }
 0x5dd   :  { %3445 = vmatpush3.msra.mxu1 %v1989_v13 }
 0x5de   :  { %3446 = vmatprep.subr.mxu1 %v1988_v16  ;;  %v2784_v57 = vld [vmem:[#allocation2] sm:$0x1] }
 0x5df   :  { %3447 = vmatpush3.msra.mxu1 %v1988_v16 }
 0x5e0   :  { %3448 = vmatprep.subr.mxu1 %v1987_v11 }
 0x5e1   :  { %3449 = vmatpush3.msra.mxu1 %v1987_v11 }
 0x5e2   :  { %3450 = vmatprep.subr.mxu1 %v1986_v12 }
 0x5e3   :  { %3451 = vmatpush3.msra.mxu1 %v1986_v12 }
 0x5e4   :  { %3452 = vmatprep.subr.mxu1 %v1985_v6 }
 0x5e5   :  { %3453 = vmatpush3.msra.mxu1 %v1985_v6 }
 0x5e6   :  { %3454 = vmatprep.subr.mxu1 %v1984_v52 }
 0x5e7   :  { %3455 = vmatpush3.msra.mxu1 %v1984_v52 }
 0x5e8   :  { %3456 = vmatprep.subr.mxu1 %v1983_v49 }
 0x5e9   :  { %3457 = vmatpush3.msra.mxu1 %v1983_v49 }
 0x5ea   :  { %3458 = vmatprep.subr.mxu1 %v1982_v18 }
 0x5eb   :  { %3459 = vmatpush3.msra.mxu1 %v1982_v18 }
 0x5ec   :  { %3461 = vmatmul.mubr.msk.f32.vlgmr.msra.gmra.mxu1 %vm2000_vm0, %v1995_v25  ;;  %3469 = vmatprep.subr.msk.mxu1 %vm96_vm1, %v2116_v39 }
 0x5ed   :  { %3463 = vmatprep.mubr.msk.f32.mxu1 %vm2000_vm0, %v1996_v55  ;;  %3470 = vmatpush3.msk.msra.mxu1 %vm96_vm1, %v2116_v39  ;;  %vm2117_vm1 = vcmask 179200   ;;  %v2358_v55 = vld [vmem:[%s5339_s9] sm:$0xff] }
 0x5ee   :  { %3471 = vmatprep.subr.mxu1 %v2115_v3 }
 0x5ef   :  { %3472 = vmatpush3.msra.mxu1 %v2115_v3 }
 0x5f0   :  { %3464 = vmatmul.mubr.msk.f32.gmra.mxu1 %vm2000_vm0, %v1997_v34  ;;  %3473 = vmatprep.subr.mxu1 %v2114_v54 }
 0x5f1   :  { %3466 = vmatprep.mubr.msk.f32.mxu1 %vm2000_vm0, %v1998_v22  ;;  %3474 = vmatpush3.msra.mxu1 %v2114_v54  ;;  %v2361_v22 = vld [vmem:[%s5339_s9 + $0x18] sm:$0xff] }
 0x5f2   :  { %3484 = vmatprep.subr.mxu1 %v5363_v4 }
 0x5f4   :  { %3467 = vmatmul.mubr.msk.f32.gmra.mxu1 %vm2000_vm0, %v1999_v28  ;;  %vm2234_vm0 = vcmask 31744   ;;  %v2360_v28 = vld [vmem:[%s5339_s9 + $0x10] sm:$0xff] }
 0x6ac   :  { %v3462_v56 = vpop.f32.mrf.mxu1 }
 0x6ae   :  { %v2085_v10 = vpop.f32.mrf.mxu1 }
 0x6af   :  { %3475 = vmatprep.mubr.msk.f32.mxu1 %vm2117_vm1, %v2085_v10  ;;  %v2362_v10 = vld [vmem:[%s5339_s9 + $0x20] sm:$0xff] }
 0x6b0   :  { %3476 = vmatmul.mubr.msk.f32.vlgmr.msra.gmra.mxu1 %vm2117_vm1, %v3462_v56  ;;  %v3465_v23 = vpop.f32.mrf.mxu1  ;;  %v2363_v56 = vld [vmem:[%s5339_s9 + $0x28] sm:$0xff] }
 0x6b2   :  { %v2095_v7 = vpop.f32.mrf.mxu1 }
 0x6b3   :  { %3478 = vmatprep.mubr.msk.f32.mxu1 %vm2117_vm1, %v2095_v7 }
 0x6b4   :  { %3479 = vmatmul.mubr.msk.f32.gmra.mxu1 %vm2117_vm1, %v3465_v23  ;;  %v3468_v37 = vpop.f32.mrf.mxu1 }
 0x6b6   :  { %v2105_v15 = vpop.f32.mrf.mxu1 }
 0x6b7   :  { %3481 = vmatprep.mubr.msk.f32.mxu1 %vm2117_vm1, %v2105_v15  ;;  %v2364_v15 = vld [vmem:[%s5339_s9 + $0x30] sm:$0xff] }
 0x6b8   :  { %3482 = vmatmul.mubr.msk.f32.gmra.mxu1 %vm2117_vm1, %v3468_v37  ;;  %v2365_v37 = vld [vmem:[%s5339_s9 + $0x38] sm:$0xff] }
 0x6b9   :  { %3496 = vmatprep.mubr.msk.f32.mxu1 %vm3633_vm2, %v5363_v4 }
 0x770   :  { %v4949_v0 = vpop.f32.mrf.mxu1 }
 0x771   :  { %2236 = vst.msk [vmem:[%s5338_s17 + $0x8] sm:$0xff] %vm2234_vm0, %v4949_v0  ;;  %2335 = vrot.lane.b32.xlu0 %v4949_v0, %s3637_s27  ;;  %2317 = vrot.lane.b32.xlu1 %v4949_v0, %s3629_s21 }
 0x772   :  { %v4960_v21 = vpop.f32.mrf.mxu1 }
 0x773   :  { %2235 = vst.msk [vmem:[%s5338_s17] sm:$0xff] %vm2234_vm0, %v4960_v21 }
 0x774   :  { %v4967_v45 = vpop.f32.mrf.mxu1 }
 0x775   :  { %2333 = vrot.lane.b32.xlu0 %v4960_v21, %s3637_s27  ;;  %2315 = vrot.lane.b32.xlu1 %v4960_v21, %s3629_s21  ;;  %2238 = vst.msk [vmem:[%s5338_s17 + $0x18] sm:$0xff] %vm2234_vm0, %v4967_v45 }
 0x776   :  { %v4978_v2 = vpop.f32.mrf.mxu1 }
 0x777   :  { %2237 = vst.msk [vmem:[%s5338_s17 + $0x10] sm:$0xff] %vm2234_vm0, %v4978_v2 }
 0x778   :  { %v4985_v50 = vpop.f32.mrf.mxu1 }
 0x779   :  { %2339 = vrot.lane.b32.xlu0 %v4967_v45, %s3637_s27  ;;  %2321 = vrot.lane.b32.xlu1 %v4967_v45, %s3629_s21  ;;  %2240 = vst.msk [vmem:[%s5338_s17 + $0x28] sm:$0xff] %vm2234_vm0, %v4985_v50 }
 0x77a   :  { %v4996_v8 = vpop.f32.mrf.mxu1 }
 0x77b   :  { %2239 = vst.msk [vmem:[%s5338_s17 + $0x20] sm:$0xff] %vm2234_vm0, %v4996_v8 }
 0x77d   :  { %2296 = vrot.lane.b32.xlu0 %v4967_v45, %s3638_s22  ;;  %2278 = vrot.lane.b32.xlu1 %v4967_v45, %s3632_s20 }
 0x781   :  { %2337 = vrot.lane.b32.xlu0 %v4978_v2, %s3637_s27  ;;  %2319 = vrot.lane.b32.xlu1 %v4978_v2, %s3629_s21 }
 0x785   :  { %2294 = vrot.lane.b32.xlu0 %v4978_v2, %s3638_s22  ;;  %2276 = vrot.lane.b32.xlu1 %v4978_v2, %s3632_s20 }
 0x789   :  { %2300 = vrot.lane.b32.xlu0 %v4985_v50, %s3638_s22  ;;  %2282 = vrot.lane.b32.xlu1 %v4985_v50, %s3632_s20 }
 0x78d   :  { %2298 = vrot.lane.b32.xlu0 %v4996_v8, %s3638_s22  ;;  %2280 = vrot.lane.b32.xlu1 %v4996_v8, %s3632_s20 }
 0x791   :  { %2292 = vrot.lane.b32.xlu0 %v4949_v0, %s3638_s22  ;;  %2274 = vrot.lane.b32.xlu1 %v4949_v0, %s3632_s20 }
 0x795   :  { %2290 = vrot.lane.b32.xlu0 %v4960_v21, %s3638_s22  ;;  %2272 = vrot.lane.b32.xlu1 %v4960_v21, %s3632_s20 }
 0x799   :  { %2343 = vrot.lane.b32.xlu0 %v4985_v50, %s3637_s27  ;;  %2325 = vrot.lane.b32.xlu1 %v4985_v50, %s3629_s21 }
 0x79d   :  { %2341 = vrot.lane.b32.xlu0 %v4996_v8, %s3637_s27  ;;  %2323 = vrot.lane.b32.xlu1 %v4996_v8, %s3629_s21 }
 0x7a1   :  { %2398 = vperm.xlu0 %3536, %v2374_v32   ;;  %2403 = vperm.xlu1 %3535, %v2375_v31  }
 0x7a5   :  { %2388 = vperm.xlu0 %3536, %v2372_v9   ;;  %2393 = vperm.xlu1 %3535, %v2373_v46  }
 0x7a9   :  { %2378 = vperm.xlu0 %3536, %v2370_v5   ;;  %2383 = vperm.xlu1 %3535, %v2371_v36  }
 0x7ad   :  { %1260 = vrot.lane.b32.xlu0 %v4442_v62, %s3639_s29  ;;  %2787 = vperm.xlu1 %3535, %v2784_v57  }
 0x7b1   :  { %1264 = vrot.lane.b32.xlu0 %v4464_v27, %s3639_s29  ;;  %1262 = vrot.lane.b32.xlu1 %v4431_v20, %s3639_s29  ;;  %v5364_v20 = vld [vmem:[#allocation3_spill] sm:$0xff] }
 0x7b5   :  { %1268 = vrot.lane.b32.xlu0 %v4486_v61, %s3639_s29  ;;  %1266 = vrot.lane.b32.xlu1 %v4453_v24, %s3639_s29 }
 0x7b9   :  { %1272 = vrot.lane.b32.xlu0 %v4508_v29, %s3639_s29  ;;  %1270 = vrot.lane.b32.xlu1 %v4475_v44, %s3639_s29 }
 0x7bd   :  { %1276 = vrot.lane.b32.xlu0 %v4530_v48, %s3639_s29  ;;  %1274 = vrot.lane.b32.xlu1 %v4497_v51, %s3639_s29 }
 0x7c1   :  { %1280 = vrot.lane.b32.xlu0 %v4552_v33, %s3639_s29  ;;  %1278 = vrot.lane.b32.xlu1 %v4519_v30, %s3639_s29 }
 0x7c5   :  { %1284 = vrot.lane.b32.xlu0 %v4574_v35, %s3639_s29  ;;  %1282 = vrot.lane.b32.xlu1 %v4541_v41, %s3639_s29 }
 0x7c9   :  { %2247 = vrot.lane.b32.xlu0 %v4960_v21, %s3640_s10  ;;  %1286 = vrot.lane.b32.xlu1 %v5364_v20, %s3639_s29 }
 0x7cd   :  { %2251 = vrot.lane.b32.xlu0 %v4978_v2, %s3640_s10  ;;  %2249 = vrot.lane.b32.xlu1 %v4949_v0, %s3640_s10 }
 0x7d1   :  { %2255 = vrot.lane.b32.xlu0 %v4996_v8, %s3640_s10  ;;  %2253 = vrot.lane.b32.xlu1 %v4967_v45, %s3640_s10 }
 0x7d5   :  { %2257 = vrot.lane.b32.xlu1 %v4985_v50, %s3640_s10 }
 0x7e3   :  { %v2336_v62 = vpop.permute.xlu0 %2335  ;;  %v2318_v24 = vpop.permute.xlu1 %2317 }
 0x7e4   :  { %v2353_v60 = vsel %vm2351_vm9, %v2318_v24, %v2336_v62 }
 0x7e7   :  { %v2334_v27 = vpop.permute.xlu0 %2333  ;;  %v2316_v44 = vpop.permute.xlu1 %2315 }
 0x7e8   :  { %v2352_v14 = vsel %vm2351_vm9, %v2316_v44, %v2334_v27 }
 0x7eb   :  { %v2340_v61 = vpop.permute.xlu0 %2339  ;;  %v2322_v51 = vpop.permute.xlu1 %2321 }
 0x7ec   :  { %v2355_v29 = vsel %vm2351_vm9, %v2322_v51, %v2340_v61 }
 0x7ed   :  { %2426 = vmatpush1.msra.mxu0 %v2355_v29 }
 0x7ee   :  { %2427 = vmatprep.subr.mxu0 %v5363_v4 }
 0x7ef   :  { %v2297_v30 = vpop.permute.xlu0 %2296  ;;  %v2279_v48 = vpop.permute.xlu1 %2278 }
 0x7f0   :  { %v2312_v42 = vsel %vm2308_vm11, %v2279_v48, %v2297_v30 }
 0x7f3   :  { %v2338_v41 = vpop.permute.xlu0 %2337  ;;  %v2320_v33 = vpop.permute.xlu1 %2319 }
 0x7f4   :  { %v2354_v35 = vsel %vm2351_vm9, %v2320_v33, %v2338_v41 }
 0x7f5   :  { %2428 = vmatpush1.msra.mxu0 %v2354_v35 }
 0x7f6   :  { %2429 = vmatprep.subr.mxu0 %v5363_v4 }
 0x7f7   :  { %v2295_v13 = vpop.permute.xlu0 %2294  ;;  %v2277_v1 = vpop.permute.xlu1 %2276  ;;  %2430 = vmatpush1.msra.mxu0 %v2353_v60 }
 0x7f8   :  { %2431 = vmatprep.subr.mxu0 %v5363_v4  ;;  %v2311_v43 = vsel %vm2308_vm11, %v2277_v1, %v2295_v13 }
 0x7f9   :  { %2432 = vmatpush1.msra.mxu0 %v2352_v14 }
 0x7fa   :  { %2433 = vmatprep.subr.mxu0 %v5363_v4 }
 0x7fb   :  { %v2301_v19 = vpop.permute.xlu0 %2300  ;;  %v2283_v16 = vpop.permute.xlu1 %2282 }
 0x7fc   :  { %v2314_v53 = vsel %vm2308_vm11, %v2283_v16, %v2301_v19 }
 0x7fd   :  { %2434 = vmatpush1.msra.mxu0 %v2314_v53 }
 0x7fe   :  { %2435 = vmatprep.subr.mxu0 %v5363_v4 }
 0x7ff   :  { %v2299_v17 = vpop.permute.xlu0 %2298  ;;  %v2281_v58 = vpop.permute.xlu1 %2280 }
 0x800   :  { %v2313_v11 = vsel %vm2308_vm11, %v2281_v58, %v2299_v17 }
 0x801   :  { %2436 = vmatpush1.msra.mxu0 %v2313_v11 }
 0x802   :  { %2437 = vmatprep.subr.mxu0 %v5363_v4 }
 0x803   :  { %v2293_v40 = vpop.permute.xlu0 %2292  ;;  %2438 = vmatpush1.msra.mxu0 %v2312_v42  ;;  %v2275_v12 = vpop.permute.xlu1 %2274 }
 0x804   :  { %2439 = vmatprep.subr.mxu0 %v5363_v4  ;;  %v2310_v26 = vsel %vm2308_vm11, %v2275_v12, %v2293_v40 }
 0x805   :  { %2440 = vmatpush1.msra.mxu0 %v2311_v43 }
 0x806   :  { %2441 = vmatprep.subr.mxu0 %v5363_v4 }
 0x807   :  { %v2291_v6 = vpop.permute.xlu0 %2290  ;;  %2442 = vmatpush1.msra.mxu0 %v2310_v26  ;;  %v2273_v59 = vpop.permute.xlu1 %2272 }
 0x808   :  { %v2309_v52 = vsel %vm2308_vm11, %v2273_v59, %v2291_v6  ;;  %2443 = vmatprep.subr.mxu0 %v5363_v4 }
 0x809   :  { %2444 = vmatpush1.msra.mxu0 %v2309_v52 }
 0x80a   :  { %2445 = vmatprep.subr.mxu0 %v5363_v4 }
 0x80b   :  { %2446 = vmatpush1.msra.mxu0 %v4985_v50  ;;  %v2344_v47 = vpop.permute.xlu0 %2343  ;;  %v2326_v49 = vpop.permute.xlu1 %2325 }
 0x80c   :  { %2447 = vmatprep.subr.mxu0 %v5363_v4  ;;  %v2357_v39 = vsel %vm2351_vm9, %v2326_v49, %v2344_v47 }
 0x80d   :  { %2448 = vmatpush1.msra.mxu0 %v4996_v8  ;;  %v2369_v8 = vld [vmem:[%s5339_s9 + $0x58] sm:$0xff] }
 0x80e   :  { %2449 = vmatprep.subr.mxu0 %v5363_v4 }
 0x80f   :  { %2450 = vmatpush1.msra.mxu0 %v4967_v45  ;;  %v2342_v18 = vpop.permute.xlu0 %2341  ;;  %v2324_v25 = vpop.permute.xlu1 %2323  ;;  %v2366_v45 = vld [vmem:[%s5339_s9 + $0x40] sm:$0xff] }
 0x810   :  { %2451 = vmatprep.subr.mxu0 %v5363_v4  ;;  %v2356_v34 = vsel %vm2351_vm9, %v2324_v25, %v2342_v18 }
 0x811   :  { %2452 = vmatpush1.msra.mxu0 %v4978_v2 }
 0x812   :  { %2453 = vmatprep.subr.mxu0 %v5363_v4 }
 0x813   :  { %2454 = vmatpush1.msra.mxu0 %v4949_v0 }
 0x814   :  { %2455 = vmatprep.subr.mxu0 %v5363_v4 }
 0x815   :  { %2456 = vmatpush1.msra.mxu0 %v4960_v21  ;;  %v2367_v21 = vld [vmem:[%s5339_s9 + $0x48] sm:$0xff] }
 0x816   :  { %2485 = vmatprep.subr.mxu0 %v5363_v4 }
 0x817   :  { %2486 = vmatpush2.msra.mxu0 %v2357_v39 }
 0x818   :  { %2487 = vmatprep.subr.mxu0 %v5363_v4 }
 0x819   :  { %2488 = vmatpush2.msra.mxu0 %v2356_v34 }
 0x81a   :  { %2490 = vmatmul.mubr.f32.vlgmr.msra.gmra.mxu0 %v2358_v55  ;;  %3516 = vmatprep.subr.mxu0 %v5363_v4 }
 0x81b   :  { %3035 = vmatprep.mubr.msk.f32.mxu0 %vm2406_vm8, %v2361_v22 }
 0x81c   :  { %v5121_v3 = vpop.permute.xlu0 %2398  ;;  %v5123_v54 = vpop.permute.xlu1 %2403 }
 0x81e   :  { %2495 = vmatmul.mubr.f32.gmra.mxu0 %v2360_v28 }
 0x81f   :  { %3036 = vmatprep.mubr.msk.f32.mxu0 %vm2406_vm8, %v2363_v56 }
 0x820   :  { %v5132_v23 = vpop.permute.xlu0 %2388  ;;  %v5134_v7 = vpop.permute.xlu1 %2393 }
 0x822   :  { %2500 = vmatmul.mubr.f32.gmra.mxu0 %v2362_v10 }
 0x823   :  { %3037 = vmatprep.mubr.msk.f32.mxu0 %vm2406_vm8, %v2365_v37 }
 0x824   :  { %v5143_v63 = vpop.permute.xlu0 %2378  ;;  %v2384_v0 = vpop.permute.xlu1 %2383 }
 0x826   :  { %2505 = vmatmul.mubr.f32.gmra.mxu0 %v2364_v15 }
 0x827   :  { %3038 = vmatprep.mubr.msk.f32.mxu0 %vm2406_vm8, %v2367_v21 }
 0x828   :  { %v1261_v2 = vpop.permute.xlu0 %1260  ;;  %v5152_v50 = vpop.permute.xlu1 %2787 }
 0x829   :  { %2977 = vst.msk [vmem:[%s5332_s16 + $0x70] sm:$0xff] %vm1230_vm6, %v1261_v2 }
 0x82a   :  { %2510 = vmatmul.mubr.f32.gmra.mxu0 %v2366_v45 }
 0x82b   :  { %3039 = vmatprep.mubr.msk.f32.mxu0 %vm2406_vm8, %v2369_v8 }
 0x82c   :  { %v1265_v32 = vpop.permute.xlu0 %1264  ;;  %v1263_v31 = vpop.permute.xlu1 %1262 }
 0x82d   :  { %2979 = vst.msk [vmem:[%s5332_s16 + $0x80] sm:$0xff] %vm1230_vm6, %v1265_v32  ;;  %2978 = vst.msk [vmem:[%s5332_s16 + $0x78] sm:$0xff] %vm1230_vm6, %v1263_v31 }
 0x82e   :  { %2515 = vmatmul.mubr.f32.gmra.mxu0 %v2368_v38 }
 0x82f   :  { %3518 = vmatprep.mubr.msk.f32.mxu0 %vm3633_vm2, %v5363_v4 }
 0x830   :  { %v1269_v9 = vpop.permute.xlu0 %1268  ;;  %v1267_v46 = vpop.permute.xlu1 %1266 }
 0x831   :  { %2981 = vst.msk [vmem:[%s5332_s16 + $0x90] sm:$0xff] %vm1230_vm6, %v1269_v9  ;;  %2980 = vst.msk [vmem:[%s5332_s16 + $0x88] sm:$0xff] %vm1230_vm6, %v1267_v46 }
 0x834   :  { %v1273_v5 = vpop.permute.xlu0 %1272  ;;  %v1271_v36 = vpop.permute.xlu1 %1270 }
 0x835   :  { %2983 = vst.msk [vmem:[%s5332_s16 + $0xa0] sm:$0xff] %vm1230_vm6, %v1273_v5  ;;  %2982 = vst.msk [vmem:[%s5332_s16 + $0x98] sm:$0xff] %vm1230_vm6, %v1271_v36 }
 0x838   :  { %v1277_v57 = vpop.permute.xlu0 %1276  ;;  %v1275_v20 = vpop.permute.xlu1 %1274 }
 0x839   :  { %2985 = vst.msk [vmem:[%s5332_s16 + $0xb0] sm:$0xff] %vm1230_vm6, %v1277_v57  ;;  %2984 = vst.msk [vmem:[%s5332_s16 + $0xa8] sm:$0xff] %vm1230_vm6, %v1275_v20 }
 0x83c   :  { %v1281_v62 = vpop.permute.xlu0 %1280  ;;  %v1279_v24 = vpop.permute.xlu1 %1278 }
 0x83d   :  { %2987 = vst.msk [vmem:[%s5332_s16 + $0xc0] sm:$0xff] %vm1230_vm6, %v1281_v62  ;;  %2986 = vst.msk [vmem:[%s5332_s16 + $0xb8] sm:$0xff] %vm1230_vm6, %v1279_v24 }
 0x840   :  { %v1285_v27 = vpop.permute.xlu0 %1284  ;;  %v1283_v44 = vpop.permute.xlu1 %1282 }
 0x841   :  { %2989 = vst.msk [vmem:[%s5332_s16 + $0xd0] sm:$0xff] %vm1230_vm6, %v1285_v27  ;;  %2988 = vst.msk [vmem:[%s5332_s16 + $0xc8] sm:$0xff] %vm1230_vm6, %v1283_v44  ;;  %v2562_v44 = vld [vmem:[%s5341_s11] sm:$0xff] }
 0x844   :  { %v2248_v61 = vpop.permute.xlu0 %2247  ;;  %v1287_v51 = vpop.permute.xlu1 %1286 }
 0x845   :  { %3028 = vst.msk [vmem:[%s5338_s17 + $0x30] sm:$0xff] %vm2234_vm0, %v2248_v61  ;;  %v2563_v61 = vld [vmem:[%s5341_s11 + $0x8] sm:$0xff] }
 0x846   :  { %2990 = vst.msk [vmem:[%s5332_s16 + $0xd8] sm:$0xf] %vm1244_vm12, %v1287_v51  ;;  %v2564_v51 = vld [vmem:[%s5341_s11 + $0x10] sm:$0xff] }
 0x848   :  { %v2252_v29 = vpop.permute.xlu0 %2251  ;;  %v2250_v30 = vpop.permute.xlu1 %2249 }
 0x849   :  { %3030 = vst.msk [vmem:[%s5338_s17 + $0x40] sm:$0xff] %vm2234_vm0, %v2252_v29  ;;  %3029 = vst.msk [vmem:[%s5338_s17 + $0x38] sm:$0xff] %vm2234_vm0, %v2250_v30  ;;  %v2654_v29 = vld [vmem:[%s5342_s12] sm:$0xff] }
 0x84c   :  { %v2256_v48 = vpop.permute.xlu0 %2255  ;;  %v2254_v41 = vpop.permute.xlu1 %2253 }
 0x84d   :  { %3032 = vst.msk [vmem:[%s5338_s17 + $0x50] sm:$0xff] %vm2234_vm0, %v2256_v48  ;;  %3031 = vst.msk [vmem:[%s5338_s17 + $0x48] sm:$0xff] %vm2234_vm0, %v2254_v41 }
 0x850   :  { %v2258_v33 = vpop.permute.xlu1 %2257 }
 0x851   :  { %3033 = vst.msk [vmem:[%s5338_s17 + $0x58] sm:$0xff] %vm2234_vm0, %v2258_v33 }
 0x8da   :  { %v2491_v35 = vpop.f32.mrf.mxu0 }
 0x8db   :  { %v2492_v26 = vadd.f32 %v2491_v35, %v5143_v63 }
 0x8dc   :  { %v2493_v60 = vpop.f32.mrf.mxu0 }
 0x8dd   :  { %v2526_v25 = vmul.f32 1.442695, %v2492_v26  ;;  %vm2520_vm4 = vcmp.gt.f32.partialorder %v2492_v26, 0.0 }
 0x8de   :  { %v2496_v13 = vpop.f32.mrf.mxu0 }
 0x8df   :  { %v2497_v11 = vadd.f32 %v2496_v13, %v2384_v0  ;;  %v2783_v13 = vld [vmem:[%s5343_s14] sm:$0x3] }
 0x8e0   :  { %v2498_v1 = vpop.f32.mrf.mxu0  ;;  %3517 = vmatpush3.msk.msra.mxu0 %vm1091_vm10, %v2783_v13  ;;  %vm2870_vm10 = vcmask 8192  }
 0x8e1   :  { %v2528_v52 = vmul.f32 1.442695, %v2497_v11  ;;  %vm2521_vm15 = vcmp.gt.f32.partialorder %v2497_v11, 0.0 }
 0x8e2   :  { %v2501_v14 = vpop.f32.mrf.mxu0 }
 0x8e3   :  { %v2502_v58 = vadd.f32 %v2501_v14, %v5132_v23 }
 0x8e4   :  { %v2503_v19 = vpop.f32.mrf.mxu0 }
 0x8e5   :  { %v2530_v6 = vmul.f32 1.442695, %v2502_v58  ;;  %vm2522_vm14 = vcmp.gt.f32.partialorder %v2502_v58, 0.0  ;;  %v2766_v19 = vld [vmem:[%s5345_s13 + $0x8] sm:$0xff] }
 0x8e6   :  { %v2506_v16 = vpop.f32.mrf.mxu0 }
 0x8e7   :  { %v2507_v53 = vadd.f32 %v2506_v16, %v5134_v7 }
 0x8e8   :  { %v2508_v17 = vpop.f32.mrf.mxu0 }
 0x8e9   :  { %v2532_v42 = vmul.f32 1.442695, %v2507_v53  ;;  %vm2523_vm13 = vcmp.gt.f32.partialorder %v2507_v53, 0.0 }
 0x8ea   :  { %v2511_v40 = vpop.f32.mrf.mxu0 }
 0x8eb   :  { %v2512_v12 = vadd.f32 %v2511_v40, %v5121_v3  ;;  %3615 = vpow2.f32 %v2532_v42 }
 0x8ec   :  { %v2513_v43 = vpop.f32.mrf.mxu0 }
 0x8ed   :  { %v2534_v59 = vmul.f32 1.442695, %v2512_v12  ;;  %vm2524_vm6 = vcmp.gt.f32.partialorder %v2512_v12, 0.0 }
 0x8ee   :  { %v2516_v47 = vpop.f32.mrf.mxu0 }
 0x8ef   :  { %3617 = vpow2.f32 %v2534_v59  ;;  %v2517_v49 = vadd.f32 %v2516_v47, %v5123_v54 }
 0x8f0   :  { %v2518_v18 = vpop.f32.mrf.mxu0  ;;  %3619 = vpow2.f32 %v2530_v6 }
 0x8f1   :  { %v2536_v39 = vmul.f32 1.442695, %v2517_v49  ;;  %3621 = vpow2.f32 %v2528_v52  ;;  %vm2525_vm12 = vcmp.gt.f32.partialorder %v2517_v49, 0.0 }
 0x8f3   :  { %3623 = vpow2.f32 %v2536_v39 }
 0x8f4   :  { %3625 = vpow2.f32 %v2526_v25 }
 0x8f8   :  { %v3616_v55 = vpop.eup %3615 }
 0x8f9   :  { %v3043_v56 = vadd.f32 -1.0, %v3616_v55 }
 0x8fb   :  { %v2547_v54 = vmul.f32 1.6732632, %v3043_v56 }
 0x8fc   :  { %v3618_v34 = vpop.eup %3617 }
 0x8fd   :  { %v3044_v22 = vadd.f32 -1.0, %v3618_v34  ;;  %v3620_v28 = vpop.eup %3619  ;;  %v2553_v31 = vsel %vm2523_vm13, %v2507_v53, %v2547_v54 }
 0x8fe   :  { %v3622_v3 = vpop.eup %3621  ;;  %v3042_v23 = vadd.f32 -1.0, %v3620_v28  ;;  %v2559_v36 = vmul.f32 1.050701, %v2553_v31 }
 0x8ff   :  { %v2548_v7 = vmul.f32 1.6732632, %v3044_v22  ;;  %v3041_v63 = vadd.f32 -1.0, %v3622_v3  ;;  %v2790_v3 = vlaneseq }
 0x900   :  { %v3624_v10 = vpop.eup %3623  ;;  %v2546_v45 = vmul.f32 1.6732632, %v3042_v23 }
 0x901   :  { %v3045_v37 = vadd.f32 -1.0, %v3624_v10  ;;  %v3626_v15 = vpop.eup %3625  ;;  %v2554_v2 = vsel %vm2524_vm6, %v2512_v12, %v2548_v7  ;;  %v2545_v32 = vmul.f32 1.6732632, %v3041_v63  ;;  %v2791_v56 = vshrl.u32 %v2790_v3, 7 }
 0x902   :  { %v3040_v21 = vadd.f32 -1.0, %v3626_v15  ;;  %v2560_v9 = vmul.f32 1.050701, %v2554_v2  ;;  %v2552_v5 = vsel %vm2522_vm14, %v2502_v58, %v2546_v45 }
 0x903   :  { %v2549_v0 = vmul.f32 1.6732632, %v3045_v37  ;;  %v2551_v57 = vsel %vm2521_vm15, %v2497_v11, %v2545_v32  ;;  %v2558_v20 = vmul.f32 1.050701, %v2552_v5  ;;  %v2767_v11 = vld [vmem:[%s5345_s13 + $0x10] sm:$0xff]  ;;  %v2792_v10 = vsub.s32 0, %v2791_v56 }
 0x904   :  { %v2544_v46 = vmul.f32 1.6732632, %v3040_v21  ;;  %v2557_v24 = vmul.f32 1.050701, %v2551_v57 }
 0x905   :  { %v2555_v8 = vsel %vm2525_vm12, %v2517_v49, %v2549_v0  ;;  %v2793_v23 = vrot.slane %v5152_v50, %v2792_v10 }
 0x906   :  { %v2561_v38 = vmul.f32 1.050701, %v2555_v8  ;;  %v2550_v62 = vsel %vm2520_vm4, %v2492_v26, %v2544_v46 }
 0x907   :  { %v2556_v27 = vmul.f32 1.050701, %v2550_v62 }
 0x908   :  { %3485 = vmatpush3.msra.mxu1 %v2561_v38 }
 0x909   :  { %3486 = vmatprep.subr.mxu1 %v5363_v4 }
 0x90a   :  { %3487 = vmatpush3.msra.mxu1 %v2560_v9 }
 0x90b   :  { %3488 = vmatprep.subr.mxu1 %v5363_v4 }
 0x90c   :  { %3489 = vmatpush3.msra.mxu1 %v2559_v36 }
 0x90d   :  { %3490 = vmatprep.subr.mxu1 %v5363_v4 }
 0x90e   :  { %3491 = vmatpush3.msra.mxu1 %v2558_v20 }
 0x90f   :  { %3492 = vmatprep.subr.mxu1 %v5363_v4 }
 0x910   :  { %3493 = vmatpush3.msra.mxu1 %v2557_v24 }
 0x911   :  { %3494 = vmatprep.subr.mxu1 %v5363_v4 }
 0x912   :  { %3495 = vmatpush3.msra.mxu1 %v2556_v27 }
 0x913   :  { %3497 = vmatmul.mubr.msk.f32.vlgmr.msra.gmra.mxu1 %vm169_vm3, %v2562_v44  ;;  %3505 = vmatprep.subr.mxu1 %v5363_v4 }
 0x914   :  { %3499 = vmatprep.mubr.msk.f32.mxu1 %vm3633_vm2, %v5363_v4  ;;  %3506 = vmatpush3.msra.mxu1 %v2654_v29 }
 0x917   :  { %3500 = vmatmul.mubr.msk.f32.gmra.mxu1 %vm169_vm3, %v2563_v61 }
 0x918   :  { %3502 = vmatprep.mubr.msk.f32.mxu1 %vm3633_vm2, %v5363_v4 }
 0x91b   :  { %3503 = vmatmul.mubr.msk.f32.gmra.mxu1 %vm169_vm3, %v2564_v51  ;;  %vm2745_vm3 = vcmask 7168  }
 0x91c   :  { %3507 = vmatprep.mubr.msk.f32.mxu1 %vm3633_vm2, %v5363_v4 }
 0x9d3   :  { %v2640_v30 = vpop.f32.mrf.mxu1 }
 0x9d4   :  { %3508 = vmatmul.mubr.msk.f32.vlgmr.msra.gmra.mxu1 %vm2655_vm5, %v2640_v30 }
 0x9d5   :  { %v3498_v48 = vpop.f32.mrf.mxu1  ;;  %3510 = vmatprep.mubr.msk.f32.mxu1 %vm3633_vm2, %v5363_v4 }
 0x9d7   :  { %v2645_v41 = vpop.f32.mrf.mxu1 }
 0x9d8   :  { %3511 = vmatmul.mubr.msk.f32.gmra.mxu1 %vm2655_vm5, %v2645_v41 }
 0x9d9   :  { %v3501_v33 = vpop.f32.mrf.mxu1  ;;  %3513 = vmatprep.mubr.msk.f32.mxu1 %vm3633_vm2, %v5363_v4  ;;  %v2765_v4 = vld [vmem:[%s5345_s13] sm:$0xff]  ;;  %vm2771_vm2 = vcmask 15360  }
 0x9db   :  { %v2650_v35 = vpop.f32.mrf.mxu1 }
 0x9dc   :  { %3514 = vmatmul.mubr.msk.f32.gmra.mxu1 %vm2655_vm5, %v2650_v35 }
 0x9dd   :  { %v3504_v60 = vpop.f32.mrf.mxu1 }
 0xa94   :  { %v2731_v1 = vpop.f32.mrf.mxu1 }
 0xa95   :  { %2746 = vst.msk [vmem:[%s5344_s18] sm:$0xff] %vm2745_vm3, %v2731_v1  ;;  %2752 = vrot.lane.b32.xlu0 %v2731_v1, %s3632_s20  ;;  %v2768_v53 = vmul.f32 %v2765_v4, %v2731_v1 }
 0xa96   :  { %v3509_v14 = vpop.f32.mrf.mxu1 }
 0xa97   :  { %v2772_v12 = vsel %vm2771_vm2, %v2768_v53, 0.0 }
 0xa98   :  { %v2736_v16 = vpop.f32.mrf.mxu1 }
 0xa99   :  { %2747 = vst.msk [vmem:[%s5344_s18 + $0x8] sm:$0xff] %vm2745_vm3, %v2736_v16  ;;  %v2769_v17 = vmul.f32 %v2766_v19, %v2736_v16  ;;  %2754 = vrot.lane.b32.xlu1 %v2736_v16, %s3632_s20 }
 0xa9a   :  { %v3512_v58 = vpop.f32.mrf.mxu1 }
 0xa9b   :  { %v2773_v42 = vsel %vm2771_vm2, %v2769_v17, 0.0 }
 0xa9c   :  { %v2741_v40 = vpop.f32.mrf.mxu1  ;;  %v2774_v26 = vadd.f32 %v2773_v42, %v2772_v12 }
 0xa9d   :  { %2748 = vst.msk [vmem:[%s5344_s18 + $0x10] sm:$0xff] %vm2745_vm3, %v2741_v40  ;;  %v2770_v43 = vmul.f32 %v2767_v11, %v2741_v40  ;;  %2756 = vrot.lane.b32.xlu0 %v2741_v40, %s3632_s20 }
 0xa9e   :  { %v3515_v6 = vpop.f32.mrf.mxu1 }
 0xa9f   :  { %v2775_v59 = vsel %vm2771_vm2, %v2770_v43, 0.0 }
 0xaa0   :  { %v2776_v52 = vadd.f32 %v2775_v59, %v2774_v26 }
 0xaa2   :  { %v2777_v47 = vrot.slane %v2776_v52, 4 }
 0xaa4   :  { %v2778_v49 = vadd.f32 %v2777_v47, %v2776_v52 }
 0xaa6   :  { %v2779_v18 = vrot.slane %v2778_v49, 2 }
 0xaa8   :  { %v2780_v25 = vadd.f32 %v2779_v18, %v2778_v49 }
 0xaaa   :  { %v2781_v39 = vrot.slane %v2780_v25, 1 }
 0xaac   :  { %v2782_v55 = vadd.f32 %v2781_v39, %v2780_v25 }
 0xaae   :  { %3519 = vmatmul.mubr.msk.f32.vlgmr.msra.gmra.mxu0 %vm2771_vm2, %v2782_v55 }
 0xb07   :  { %v2753_v34 = vpop.permute.xlu0 %2752 }
 0xb08   :  { %3052 = vst.msk [vmem:[%s5344_s18 + $0x18] sm:$0xff] %vm2745_vm3, %v2753_v34 }
 0xb0b   :  { %v2755_v22 = vpop.permute.xlu1 %2754 }
 0xb0c   :  { %3053 = vst.msk [vmem:[%s5344_s18 + $0x20] sm:$0xff] %vm2745_vm3, %v2755_v22 }
 0xb0f   :  { %v2757_v28 = vpop.permute.xlu0 %2756 }
 0xb10   :  { %3054 = vst.msk [vmem:[%s5344_s18 + $0x28] sm:$0xff] %vm2745_vm3, %v2757_v28 }
 0xb6e   :  { %v2866_v7 = vpop.f32.mrf.mxu0 }
 0xb6f   :  { %v2867_v37 = vadd.f32 %v2866_v7, %v2793_v23 }
 0xb70   :  { %v3520_v15 = vpop.f32.mrf.mxu0 }
 0xb71   :  { %2871 = vst.msk [vmem:[%s5346_s19] sm:$0x1] %vm2870_vm10, %v2867_v37 }

</bundles_post_ra>
